<compile_context>
chip_gen: v7x
topology: tpu7x:2x2x1
jax: 0.10.0
libtpu: 0.0.40
codegen_flags: <defaults>
</compile_context>

<pallas_src>
import jax
import jax.numpy as jnp
from jax.experimental import pallas as pl
from jax.experimental.pallas import tpu as pltpu


def _seq2seq_kernel(x_ref, h0_ref, c0_ref,
                    wih_e_ref, whh_e_ref, b_e_ref,
                    wih_d_ref, whh_d_ref, b_d_ref,
                    wlin_ref, blin_ref,
                    preds_ref,
                    xw_sc):
    B, T = x_ref.shape
    H = h0_ref.shape[1]
    P = preds_ref.shape[1]

    # ---------------- prologue: precompute encoder input contributions ----------------
    # xw[t] = x_t * W_ih + (b_ih + b_hh)  for every step, stored in VMEM scratch.
    # All slices are static; this work is off the recurrence critical path.
    for t in range(T):
        xw_sc[t] = x_ref[:, t:t + 1] * wih_e_ref[...] + b_e_ref[...]     # (B, 4H)

    # ---------------- LSTM encoder, fully unrolled, state in vregs ----------------
    h = h0_ref[...]                                                       # (B, H)
    c = c0_ref[...]                                                       # (B, H)
    for t in range(T):
        # Recurrent weight read stays inside the step body (scheduler-local load,
        # no 64-vreg value live across the whole unrolled loop).
        gates = xw_sc[t] + jnp.dot(h, whh_e_ref[...],
                                   preferred_element_type=jnp.float32)    # (B, 4H)
        i = jax.nn.sigmoid(gates[:, 0:H])
        f = jax.nn.sigmoid(gates[:, H:2 * H])
        g = jnp.tanh(gates[:, 2 * H:3 * H])
        o = jax.nn.sigmoid(gates[:, 3 * H:4 * H])
        c = f * c + i * g
        h = o * jnp.tanh(c)

    # ---------------- tanh-RNN decoder, autoregressive, fully unrolled ----------------
    h_d = h
    dec_in = x_ref[:, T - 1:T]          # == input_seq[-1]  (input_size == output_size == 1)
    preds = []
    for _ in range(P):
        pre = (dec_in * wih_d_ref[...]
               + jnp.dot(h_d, whh_d_ref[...], preferred_element_type=jnp.float32)
               + b_d_ref[...])                                            # (B, H)
        h_d = jnp.tanh(pre)
        # Linear(H -> 1) + ReLU as a lane-dense MXU dot; real output lives in column 0.
        lin = jnp.dot(h_d, wlin_ref[...], preferred_element_type=jnp.float32)  # (B, 128)
        pred = jnp.maximum(lin[:, 0:1] + blin_ref[...], 0.0)              # (B, 1)
        preds.append(pred)
        dec_in = pred

    # Single lane-contiguous store of all predictions after the loop.
    preds_ref[...] = jnp.concatenate(preds, axis=1)                       # (B, P)


def init_params(key, hidden_layer_size):
    """Deterministic PyTorch-layout parameters (uniform(-1/sqrt(H), 1/sqrt(H)))."""
    H = hidden_layer_size
    k = 1.0 / float(jnp.sqrt(jnp.float32(H)))
    keys = jax.random.split(key, 10)
    u = lambda kk, shape: jax.random.uniform(kk, shape, jnp.float32, -k, k)
    return {
        "enc_w_ih": u(keys[0], (4 * H, 1)),
        "enc_w_hh": u(keys[1], (4 * H, H)),
        "enc_b_ih": u(keys[2], (4 * H,)),
        "enc_b_hh": u(keys[3], (4 * H,)),
        "dec_w_ih": u(keys[4], (H, 1)),
        "dec_w_hh": u(keys[5], (H, H)),
        "dec_b_ih": u(keys[6], (H,)),
        "dec_b_hh": u(keys[7], (H,)),
        "lin_w":    u(keys[8], (1, H)),
        "lin_b":    u(keys[9], (1,)),
    }


def _convert_params(p):
    """PyTorch layout -> kernel layout."""
    return (
        p["enc_w_ih"].T,                                   # (1, 4H)
        p["enc_w_hh"].T,                                   # (H, 4H)
        (p["enc_b_ih"] + p["enc_b_hh"])[None, :],          # (1, 4H)
        p["dec_w_ih"].T,                                   # (1, H)
        p["dec_w_hh"].T,                                   # (H, H)
        (p["dec_b_ih"] + p["dec_b_hh"])[None, :],          # (1, H)
        p["lin_w"],                                        # (1, H)
        p["lin_b"].reshape(1, 1),                          # (1, 1)
    )


def lstm_forward(params, input_seq, output_seq, batch_size, hidden_cell, pred_length):
    """Mirrors LSTM.forward(input_seq, output_seq, batch_size, hidden_cell, pred_length)."""
    T = input_seq.shape[0]
    B = batch_size
    h0 = hidden_cell[0].reshape(B, -1).astype(jnp.float32)   # (B, H)
    c0 = hidden_cell[1].reshape(B, -1).astype(jnp.float32)   # (B, H)
    H = h0.shape[1]

    x = input_seq.reshape(T, B, 1).astype(jnp.float32)
    # NOTE: both branches of the dec_input selection in the PyTorch code collapse to
    # the same value when input_size == 1 (input_seq[-1, :, 0] vs input_seq[-1]).
    x_bt = jnp.transpose(x[:, :, 0])                          # (B, T) -- layout plumbing only

    (w_ih_e, w_hh_e, b_e, w_ih_d, w_hh_d, b_d, w_lin, b_lin) = _convert_params(params)

    # Zero-pad the Linear(H,1) weight to a lane-dense (H, 128) column matrix so the
    # final projection is a well-shaped MXU dot (column 0 holds the real weights).
    w_lin_pad = jnp.zeros((H, 128), jnp.float32).at[:, 0:1].set(jnp.transpose(w_lin))

    full = lambda shape: pl.BlockSpec(shape, lambda i: (0,) * len(shape))

    out = pl.pallas_call(
        _seq2seq_kernel,
        out_shape=jax.ShapeDtypeStruct((B, pred_length), jnp.float32),
        grid=(1,),
        in_specs=[
            full((B, T)), full((B, H)), full((B, H)),
            full((1, 4 * H)), full((H, 4 * H)), full((1, 4 * H)),
            full((1, H)), full((H, H)), full((1, H)),
            full((H, 128)), full((1, 1)),
        ],
        out_specs=full((B, pred_length)),
        scratch_shapes=[
            pltpu.VMEM((T, B, 4 * H), jnp.float32),   # precomputed x_t*W_ih + b for all steps
        ],
        compiler_params=pltpu.CompilerParams(
            dimension_semantics=("arbitrary",)),
    )(x_bt, h0, c0, w_ih_e, w_hh_e, b_e, w_ih_d, w_hh_d, b_d, w_lin_pad, b_lin)

    # (B, P) -> (P, B, 1), same as torch.cat of pred_length (1, B, 1) tensors
    return jnp.transpose(out)[:, :, None]


def reference_forward(params, input_seq, output_seq, batch_size, hidden_cell, pred_length):
    """Pure-JAX reference with identical semantics (for correctness check)."""
    (w_ih_e, w_hh_e, b_e, w_ih_d, w_hh_d, b_d, w_lin, b_lin) = _convert_params(params)
    T = input_seq.shape[0]
    B = batch_size
    h = hidden_cell[0].reshape(B, -1).astype(jnp.float32)
    c = hidden_cell[1].reshape(B, -1).astype(jnp.float32)
    H = h.shape[1]
    x_bt = jnp.transpose(input_seq.reshape(T, B, 1)[:, :, 0]).astype(jnp.float32)

    for t in range(T):
        x_t = x_bt[:, t:t + 1]
        gates = x_t * w_ih_e + h @ w_hh_e + b_e
        i = jax.nn.sigmoid(gates[:, 0:H]); f = jax.nn.sigmoid(gates[:, H:2 * H])
        g = jnp.tanh(gates[:, 2 * H:3 * H]); o = jax.nn.sigmoid(gates[:, 3 * H:4 * H])
        c = f * c + i * g
        h = o * jnp.tanh(c)

    h_dec = h
    dec_in = x_bt[:, T - 1:T]
    preds = []
    for _ in range(pred_length):
        h_dec = jnp.tanh(dec_in * w_ih_d + h_dec @ w_hh_d + b_d)
        pred = jnp.maximum(jnp.sum(h_dec * w_lin, axis=-1, keepdims=True) + b_lin, 0.0)
        preds.append(pred)
        dec_in = pred
    return jnp.transpose(jnp.concatenate(preds, axis=1))[:, :, None]


if __name__ == "__main__":
    B, T, H, P = 8, 8, 128, 4          # batch, enc seq len, hidden, pred_length
    key = jax.random.PRNGKey(0)
    k_par, k_x, k_h, k_c = jax.random.split(key, 4)

    params = init_params(k_par, H)

    input_seq = jax.random.normal(k_x, (T, B, 1), jnp.float32)      # (seq, batch, input_size)
    output_seq = jnp.zeros((P, B, 1), jnp.float32)                  # only its last dim is inspected
    hidden_cell = (0.1 * jax.random.normal(k_h, (1, B, H), jnp.float32),
                   0.1 * jax.random.normal(k_c, (1, B, H), jnp.float32))

    out = lstm_forward(params, input_seq, output_seq, B, hidden_cell, P)
    out = jax.block_until_ready(out)

    ref = reference_forward(params, input_seq, output_seq, B, hidden_cell, P)
    assert out.shape == (P, B, 1), out.shape
    assert jnp.allclose(out, ref, rtol=1e-3, atol=1e-3), float(jnp.max(jnp.abs(out - ref)))

    print("KERNEL_OK")
</pallas_src>

<mosaic_0001>
module attributes {stable_mosaic.version = 11 : i64} {
  func.func @_seq2seq_kernel(%arg0: i32, %arg1: memref<8x8xf32, #tpu.memory_space<vmem>>, %arg2: memref<8x128xf32, #tpu.memory_space<vmem>>, %arg3: memref<8x128xf32, #tpu.memory_space<vmem>>, %arg4: memref<1x512xf32, #tpu.memory_space<vmem>>, %arg5: memref<128x512xf32, #tpu.memory_space<vmem>>, %arg6: memref<1x512xf32, #tpu.memory_space<vmem>>, %arg7: memref<1x128xf32, #tpu.memory_space<vmem>>, %arg8: memref<128x128xf32, #tpu.memory_space<vmem>>, %arg9: memref<1x128xf32, #tpu.memory_space<vmem>>, %arg10: memref<128x128xf32, #tpu.memory_space<vmem>>, %arg11: memref<1x1xf32, #tpu.memory_space<vmem>>, %arg12: memref<8x4xf32, #tpu.memory_space<vmem>>, %arg13: memref<8x8x512xf32, #tpu.memory_space<vmem>>) attributes {dimension_semantics = [#tpu.dimension_semantics<arbitrary>], iteration_bounds = array<i64: 1>, scalar_prefetch = 0 : i64, scratch_operands = 1 : i64, tpu.core_type = #tpu.core_type<tc>, window_params = [{pipeline_mode = #tpu.pipeline_mode<synchronous>, transform_indices = @transform_0, window_bounds = array<i64: 8, 8>}, {pipeline_mode = #tpu.pipeline_mode<synchronous>, transform_indices = @transform_1, window_bounds = array<i64: 8, 128>}, {pipeline_mode = #tpu.pipeline_mode<synchronous>, transform_indices = @transform_2, window_bounds = array<i64: 8, 128>}, {pipeline_mode = #tpu.pipeline_mode<synchronous>, transform_indices = @transform_3, window_bounds = array<i64: 1, 512>}, {pipeline_mode = #tpu.pipeline_mode<synchronous>, transform_indices = @transform_4, window_bounds = array<i64: 128, 512>}, {pipeline_mode = #tpu.pipeline_mode<synchronous>, transform_indices = @transform_5, window_bounds = array<i64: 1, 512>}, {pipeline_mode = #tpu.pipeline_mode<synchronous>, transform_indices = @transform_6, window_bounds = array<i64: 1, 128>}, {pipeline_mode = #tpu.pipeline_mode<synchronous>, transform_indices = @transform_7, window_bounds = array<i64: 128, 128>}, {pipeline_mode = #tpu.pipeline_mode<synchronous>, transform_indices = @transform_8, window_bounds = array<i64: 1, 128>}, {pipeline_mode = #tpu.pipeline_mode<synchronous>, transform_indices = @transform_9, window_bounds = array<i64: 128, 128>}, {pipeline_mode = #tpu.pipeline_mode<synchronous>, transform_indices = @transform_10, window_bounds = array<i64: 1, 1>}, {pipeline_mode = #tpu.pipeline_mode<synchronous>, transform_indices = @transform_11, window_bounds = array<i64: 8, 4>}]} {
    %c0 = arith.constant 0 : index
    %c0_0 = arith.constant 0 : index
    %0 = vector.load %arg1[%c0, %c0_0] : memref<8x8xf32, #tpu.memory_space<vmem>>, vector<8x1xf32>
    %c0_1 = arith.constant 0 : index
    %c0_2 = arith.constant 0 : index
    %1 = vector.load %arg4[%c0_1, %c0_2] : memref<1x512xf32, #tpu.memory_space<vmem>>, vector<1x512xf32>
    %2 = vector.broadcast %0 : vector<8x1xf32> to vector<8x512xf32>
    %3 = vector.broadcast %1 : vector<1x512xf32> to vector<8x512xf32>
    %4 = arith.mulf %2, %3 : vector<8x512xf32>
    %c0_3 = arith.constant 0 : index
    %c0_4 = arith.constant 0 : index
    %5 = vector.load %arg6[%c0_3, %c0_4] : memref<1x512xf32, #tpu.memory_space<vmem>>, vector<1x512xf32>
    %6 = vector.broadcast %5 : vector<1x512xf32> to vector<8x512xf32>
    %7 = arith.addf %4, %6 : vector<8x512xf32>
    %c0_5 = arith.constant 0 : index
    %c0_6 = arith.constant 0 : index
    %c0_7 = arith.constant 0 : index
    %8 = vector.load %arg13[%c0_5, %c0_6, %c0_7] : memref<8x8x512xf32, #tpu.memory_space<vmem>>, vector<1x8x512xf32>
    %9 = vector.shape_cast %8 : vector<1x8x512xf32> to vector<8x512xf32>
    %10 = vector.shape_cast %7 : vector<8x512xf32> to vector<1x8x512xf32>
    tpu.vector_store %arg13[%c0_5, %c0_6, %c0_7], %10 {strides = array<i32>} : memref<8x8x512xf32, #tpu.memory_space<vmem>>, vector<1x8x512xf32>,
    %c0_8 = arith.constant 0 : index
    %c1 = arith.constant 1 : index
    %11 = vector.load %arg1[%c0_8, %c1] : memref<8x8xf32, #tpu.memory_space<vmem>>, vector<8x1xf32>
    %c0_9 = arith.constant 0 : index
    %c0_10 = arith.constant 0 : index
    %12 = vector.load %arg4[%c0_9, %c0_10] : memref<1x512xf32, #tpu.memory_space<vmem>>, vector<1x512xf32>
    %13 = vector.broadcast %11 : vector<8x1xf32> to vector<8x512xf32>
    %14 = vector.broadcast %12 : vector<1x512xf32> to vector<8x512xf32>
    %15 = arith.mulf %13, %14 : vector<8x512xf32>
    %c0_11 = arith.constant 0 : index
    %c0_12 = arith.constant 0 : index
    %16 = vector.load %arg6[%c0_11, %c0_12] : memref<1x512xf32, #tpu.memory_space<vmem>>, vector<1x512xf32>
    %17 = vector.broadcast %16 : vector<1x512xf32> to vector<8x512xf32>
    %18 = arith.addf %15, %17 : vector<8x512xf32>
    %c1_13 = arith.constant 1 : index
    %c0_14 = arith.constant 0 : index
    %c0_15 = arith.constant 0 : index
    %19 = vector.load %arg13[%c1_13, %c0_14, %c0_15] : memref<8x8x512xf32, #tpu.memory_space<vmem>>, vector<1x8x512xf32>
    %20 = vector.shape_cast %19 : vector<1x8x512xf32> to vector<8x512xf32>
    %21 = vector.shape_cast %18 : vector<8x512xf32> to vector<1x8x512xf32>
    tpu.vector_store %arg13[%c1_13, %c0_14, %c0_15], %21 {strides = array<i32>} : memref<8x8x512xf32, #tpu.memory_space<vmem>>, vector<1x8x512xf32>,
    %c0_16 = arith.constant 0 : index
    %c2 = arith.constant 2 : index
    %22 = vector.load %arg1[%c0_16, %c2] : memref<8x8xf32, #tpu.memory_space<vmem>>, vector<8x1xf32>
    %c0_17 = arith.constant 0 : index
    %c0_18 = arith.constant 0 : index
    %23 = vector.load %arg4[%c0_17, %c0_18] : memref<1x512xf32, #tpu.memory_space<vmem>>, vector<1x512xf32>
    %24 = vector.broadcast %22 : vector<8x1xf32> to vector<8x512xf32>
    %25 = vector.broadcast %23 : vector<1x512xf32> to vector<8x512xf32>
    %26 = arith.mulf %24, %25 : vector<8x512xf32>
    %c0_19 = arith.constant 0 : index
    %c0_20 = arith.constant 0 : index
    %27 = vector.load %arg6[%c0_19, %c0_20] : memref<1x512xf32, #tpu.memory_space<vmem>>, vector<1x512xf32>
    %28 = vector.broadcast %27 : vector<1x512xf32> to vector<8x512xf32>
    %29 = arith.addf %26, %28 : vector<8x512xf32>
    %c2_21 = arith.constant 2 : index
    %c0_22 = arith.constant 0 : index
    %c0_23 = arith.constant 0 : index
    %30 = vector.load %arg13[%c2_21, %c0_22, %c0_23] : memref<8x8x512xf32, #tpu.memory_space<vmem>>, vector<1x8x512xf32>
    %31 = vector.shape_cast %30 : vector<1x8x512xf32> to vector<8x512xf32>
    %32 = vector.shape_cast %29 : vector<8x512xf32> to vector<1x8x512xf32>
    tpu.vector_store %arg13[%c2_21, %c0_22, %c0_23], %32 {strides = array<i32>} : memref<8x8x512xf32, #tpu.memory_space<vmem>>, vector<1x8x512xf32>,
    %c0_24 = arith.constant 0 : index
    %c3 = arith.constant 3 : index
    %33 = vector.load %arg1[%c0_24, %c3] : memref<8x8xf32, #tpu.memory_space<vmem>>, vector<8x1xf32>
    %c0_25 = arith.constant 0 : index
    %c0_26 = arith.constant 0 : index
    %34 = vector.load %arg4[%c0_25, %c0_26] : memref<1x512xf32, #tpu.memory_space<vmem>>, vector<1x512xf32>
    %35 = vector.broadcast %33 : vector<8x1xf32> to vector<8x512xf32>
    %36 = vector.broadcast %34 : vector<1x512xf32> to vector<8x512xf32>
    %37 = arith.mulf %35, %36 : vector<8x512xf32>
    %c0_27 = arith.constant 0 : index
    %c0_28 = arith.constant 0 : index
    %38 = vector.load %arg6[%c0_27, %c0_28] : memref<1x512xf32, #tpu.memory_space<vmem>>, vector<1x512xf32>
    %39 = vector.broadcast %38 : vector<1x512xf32> to vector<8x512xf32>
    %40 = arith.addf %37, %39 : vector<8x512xf32>
    %c3_29 = arith.constant 3 : index
    %c0_30 = arith.constant 0 : index
    %c0_31 = arith.constant 0 : index
    %41 = vector.load %arg13[%c3_29, %c0_30, %c0_31] : memref<8x8x512xf32, #tpu.memory_space<vmem>>, vector<1x8x512xf32>
    %42 = vector.shape_cast %41 : vector<1x8x512xf32> to vector<8x512xf32>
    %43 = vector.shape_cast %40 : vector<8x512xf32> to vector<1x8x512xf32>
    tpu.vector_store %arg13[%c3_29, %c0_30, %c0_31], %43 {strides = array<i32>} : memref<8x8x512xf32, #tpu.memory_space<vmem>>, vector<1x8x512xf32>,
    %c0_32 = arith.constant 0 : index
    %c4 = arith.constant 4 : index
    %44 = vector.load %arg1[%c0_32, %c4] : memref<8x8xf32, #tpu.memory_space<vmem>>, vector<8x1xf32>
    %c0_33 = arith.constant 0 : index
    %c0_34 = arith.constant 0 : index
    %45 = vector.load %arg4[%c0_33, %c0_34] : memref<1x512xf32, #tpu.memory_space<vmem>>, vector<1x512xf32>
    %46 = vector.broadcast %44 : vector<8x1xf32> to vector<8x512xf32>
    %47 = vector.broadcast %45 : vector<1x512xf32> to vector<8x512xf32>
    %48 = arith.mulf %46, %47 : vector<8x512xf32>
    %c0_35 = arith.constant 0 : index
    %c0_36 = arith.constant 0 : index
    %49 = vector.load %arg6[%c0_35, %c0_36] : memref<1x512xf32, #tpu.memory_space<vmem>>, vector<1x512xf32>
    %50 = vector.broadcast %49 : vector<1x512xf32> to vector<8x512xf32>
    %51 = arith.addf %48, %50 : vector<8x512xf32>
    %c4_37 = arith.constant 4 : index
    %c0_38 = arith.constant 0 : index
    %c0_39 = arith.constant 0 : index
    %52 = vector.load %arg13[%c4_37, %c0_38, %c0_39] : memref<8x8x512xf32, #tpu.memory_space<vmem>>, vector<1x8x512xf32>
    %53 = vector.shape_cast %52 : vector<1x8x512xf32> to vector<8x512xf32>
    %54 = vector.shape_cast %51 : vector<8x512xf32> to vector<1x8x512xf32>
    tpu.vector_store %arg13[%c4_37, %c0_38, %c0_39], %54 {strides = array<i32>} : memref<8x8x512xf32, #tpu.memory_space<vmem>>, vector<1x8x512xf32>,
    %c0_40 = arith.constant 0 : index
    %c5 = arith.constant 5 : index
    %55 = vector.load %arg1[%c0_40, %c5] : memref<8x8xf32, #tpu.memory_space<vmem>>, vector<8x1xf32>
    %c0_41 = arith.constant 0 : index
    %c0_42 = arith.constant 0 : index
    %56 = vector.load %arg4[%c0_41, %c0_42] : memref<1x512xf32, #tpu.memory_space<vmem>>, vector<1x512xf32>
    %57 = vector.broadcast %55 : vector<8x1xf32> to vector<8x512xf32>
    %58 = vector.broadcast %56 : vector<1x512xf32> to vector<8x512xf32>
    %59 = arith.mulf %57, %58 : vector<8x512xf32>
    %c0_43 = arith.constant 0 : index
    %c0_44 = arith.constant 0 : index
    %60 = vector.load %arg6[%c0_43, %c0_44] : memref<1x512xf32, #tpu.memory_space<vmem>>, vector<1x512xf32>
    %61 = vector.broadcast %60 : vector<1x512xf32> to vector<8x512xf32>
    %62 = arith.addf %59, %61 : vector<8x512xf32>
    %c5_45 = arith.constant 5 : index
    %c0_46 = arith.constant 0 : index
    %c0_47 = arith.constant 0 : index
    %63 = vector.load %arg13[%c5_45, %c0_46, %c0_47] : memref<8x8x512xf32, #tpu.memory_space<vmem>>, vector<1x8x512xf32>
    %64 = vector.shape_cast %63 : vector<1x8x512xf32> to vector<8x512xf32>
    %65 = vector.shape_cast %62 : vector<8x512xf32> to vector<1x8x512xf32>
    tpu.vector_store %arg13[%c5_45, %c0_46, %c0_47], %65 {strides = array<i32>} : memref<8x8x512xf32, #tpu.memory_space<vmem>>, vector<1x8x512xf32>,
    %c0_48 = arith.constant 0 : index
    %c6 = arith.constant 6 : index
    %66 = vector.load %arg1[%c0_48, %c6] : memref<8x8xf32, #tpu.memory_space<vmem>>, vector<8x1xf32>
    %c0_49 = arith.constant 0 : index
    %c0_50 = arith.constant 0 : index
    %67 = vector.load %arg4[%c0_49, %c0_50] : memref<1x512xf32, #tpu.memory_space<vmem>>, vector<1x512xf32>
    %68 = vector.broadcast %66 : vector<8x1xf32> to vector<8x512xf32>
    %69 = vector.broadcast %67 : vector<1x512xf32> to vector<8x512xf32>
    %70 = arith.mulf %68, %69 : vector<8x512xf32>
    %c0_51 = arith.constant 0 : index
    %c0_52 = arith.constant 0 : index
    %71 = vector.load %arg6[%c0_51, %c0_52] : memref<1x512xf32, #tpu.memory_space<vmem>>, vector<1x512xf32>
    %72 = vector.broadcast %71 : vector<1x512xf32> to vector<8x512xf32>
    %73 = arith.addf %70, %72 : vector<8x512xf32>
    %c6_53 = arith.constant 6 : index
    %c0_54 = arith.constant 0 : index
    %c0_55 = arith.constant 0 : index
    %74 = vector.load %arg13[%c6_53, %c0_54, %c0_55] : memref<8x8x512xf32, #tpu.memory_space<vmem>>, vector<1x8x512xf32>
    %75 = vector.shape_cast %74 : vector<1x8x512xf32> to vector<8x512xf32>
    %76 = vector.shape_cast %73 : vector<8x512xf32> to vector<1x8x512xf32>
    tpu.vector_store %arg13[%c6_53, %c0_54, %c0_55], %76 {strides = array<i32>} : memref<8x8x512xf32, #tpu.memory_space<vmem>>, vector<1x8x512xf32>,
    %c0_56 = arith.constant 0 : index
    %c7 = arith.constant 7 : index
    %77 = vector.load %arg1[%c0_56, %c7] : memref<8x8xf32, #tpu.memory_space<vmem>>, vector<8x1xf32>
    %c0_57 = arith.constant 0 : index
    %c0_58 = arith.constant 0 : index
    %78 = vector.load %arg4[%c0_57, %c0_58] : memref<1x512xf32, #tpu.memory_space<vmem>>, vector<1x512xf32>
    %79 = vector.broadcast %77 : vector<8x1xf32> to vector<8x512xf32>
    %80 = vector.broadcast %78 : vector<1x512xf32> to vector<8x512xf32>
    %81 = arith.mulf %79, %80 : vector<8x512xf32>
    %c0_59 = arith.constant 0 : index
    %c0_60 = arith.constant 0 : index
    %82 = vector.load %arg6[%c0_59, %c0_60] : memref<1x512xf32, #tpu.memory_space<vmem>>, vector<1x512xf32>
    %83 = vector.broadcast %82 : vector<1x512xf32> to vector<8x512xf32>
    %84 = arith.addf %81, %83 : vector<8x512xf32>
    %c7_61 = arith.constant 7 : index
    %c0_62 = arith.constant 0 : index
    %c0_63 = arith.constant 0 : index
    %85 = vector.load %arg13[%c7_61, %c0_62, %c0_63] : memref<8x8x512xf32, #tpu.memory_space<vmem>>, vector<1x8x512xf32>
    %86 = vector.shape_cast %85 : vector<1x8x512xf32> to vector<8x512xf32>
    %87 = vector.shape_cast %84 : vector<8x512xf32> to vector<1x8x512xf32>
    tpu.vector_store %arg13[%c7_61, %c0_62, %c0_63], %87 {strides = array<i32>} : memref<8x8x512xf32, #tpu.memory_space<vmem>>, vector<1x8x512xf32>,
    %c0_64 = arith.constant 0 : index
    %c0_65 = arith.constant 0 : index
    %88 = vector.load %arg2[%c0_64, %c0_65] : memref<8x128xf32, #tpu.memory_space<vmem>>, vector<8x128xf32>
    %c0_66 = arith.constant 0 : index
    %c0_67 = arith.constant 0 : index
    %89 = vector.load %arg3[%c0_66, %c0_67] : memref<8x128xf32, #tpu.memory_space<vmem>>, vector<8x128xf32>
    %c0_68 = arith.constant 0 : index
    %c0_69 = arith.constant 0 : index
    %c0_70 = arith.constant 0 : index
    %90 = vector.load %arg13[%c0_68, %c0_69, %c0_70] : memref<8x8x512xf32, #tpu.memory_space<vmem>>, vector<1x8x512xf32>
    %91 = vector.shape_cast %90 : vector<1x8x512xf32> to vector<8x512xf32>
    %c0_71 = arith.constant 0 : index
    %c0_72 = arith.constant 0 : index
    %92 = vector.load %arg5[%c0_71, %c0_72] : memref<128x512xf32, #tpu.memory_space<vmem>>, vector<128x512xf32>
    %cst = arith.constant dense<0.000000e+00> : vector<8x512xf32>
    %93 = tpu.matmul %88, %92, %cst {dimension_numbers = #tpu.dot_dimension_numbers<[1], [0], [0], [1], [0, 0, 1, 1], [], []>} : vector<8x128xf32>, vector<128x512xf32>, vector<8x512xf32> -> vector<8x512xf32>
    %94 = arith.addf %91, %93 : vector<8x512xf32>
    %95 = vector.extract_strided_slice %94 {offsets = [0, 0], sizes = [8, 128], strides = [1, 1]} : vector<8x512xf32> to vector<8x128xf32>
    %96 = arith.negf %95 : vector<8x128xf32>
    %97 = math.exp %96 : vector<8x128xf32>
    %cst_73 = arith.constant 1.000000e+00 : f32
    %98 = vector.broadcast %cst_73 : f32 to vector<8x128xf32>
    %99 = arith.addf %98, %97 : vector<8x128xf32>
    %100 = arith.divf %98, %99 : vector<8x128xf32>
    %101 = vector.extract_strided_slice %94 {offsets = [0, 128], sizes = [8, 128], strides = [1, 1]} : vector<8x512xf32> to vector<8x128xf32>
    %102 = arith.negf %101 : vector<8x128xf32>
    %103 = math.exp %102 : vector<8x128xf32>
    %cst_74 = arith.constant 1.000000e+00 : f32
    %104 = vector.broadcast %cst_74 : f32 to vector<8x128xf32>
    %105 = arith.addf %104, %103 : vector<8x128xf32>
    %106 = arith.divf %104, %105 : vector<8x128xf32>
    %107 = vector.extract_strided_slice %94 {offsets = [0, 256], sizes = [8, 128], strides = [1, 1]} : vector<8x512xf32> to vector<8x128xf32>
    %108 = math.tanh %107 : vector<8x128xf32>
    %109 = vector.extract_strided_slice %94 {offsets = [0, 384], sizes = [8, 128], strides = [1, 1]} : vector<8x512xf32> to vector<8x128xf32>
    %110 = arith.negf %109 : vector<8x128xf32>
    %111 = math.exp %110 : vector<8x128xf32>
    %cst_75 = arith.constant 1.000000e+00 : f32
    %112 = vector.broadcast %cst_75 : f32 to vector<8x128xf32>
    %113 = arith.addf %112, %111 : vector<8x128xf32>
    %114 = arith.divf %112, %113 : vector<8x128xf32>
    %115 = arith.mulf %106, %89 : vector<8x128xf32>
    %116 = arith.mulf %100, %108 : vector<8x128xf32>
    %117 = arith.addf %115, %116 : vector<8x128xf32>
    %118 = math.tanh %117 : vector<8x128xf32>
    %119 = arith.mulf %114, %118 : vector<8x128xf32>
    %c1_76 = arith.constant 1 : index
    %c0_77 = arith.constant 0 : index
    %c0_78 = arith.constant 0 : index
    %120 = vector.load %arg13[%c1_76, %c0_77, %c0_78] : memref<8x8x512xf32, #tpu.memory_space<vmem>>, vector<1x8x512xf32>
    %121 = vector.shape_cast %120 : vector<1x8x512xf32> to vector<8x512xf32>
    %c0_79 = arith.constant 0 : index
    %c0_80 = arith.constant 0 : index
    %122 = vector.load %arg5[%c0_79, %c0_80] : memref<128x512xf32, #tpu.memory_space<vmem>>, vector<128x512xf32>
    %cst_81 = arith.constant dense<0.000000e+00> : vector<8x512xf32>
    %123 = tpu.matmul %119, %122, %cst_81 {dimension_numbers = #tpu.dot_dimension_numbers<[1], [0], [0], [1], [0, 0, 1, 1], [], []>} : vector<8x128xf32>, vector<128x512xf32>, vector<8x512xf32> -> vector<8x512xf32>
    %124 = arith.addf %121, %123 : vector<8x512xf32>
    %125 = vector.extract_strided_slice %124 {offsets = [0, 0], sizes = [8, 128], strides = [1, 1]} : vector<8x512xf32> to vector<8x128xf32>
    %126 = arith.negf %125 : vector<8x128xf32>
    %127 = math.exp %126 : vector<8x128xf32>
    %cst_82 = arith.constant 1.000000e+00 : f32
    %128 = vector.broadcast %cst_82 : f32 to vector<8x128xf32>
    %129 = arith.addf %128, %127 : vector<8x128xf32>
    %130 = arith.divf %128, %129 : vector<8x128xf32>
    %131 = vector.extract_strided_slice %124 {offsets = [0, 128], sizes = [8, 128], strides = [1, 1]} : vector<8x512xf32> to vector<8x128xf32>
    %132 = arith.negf %131 : vector<8x128xf32>
    %133 = math.exp %132 : vector<8x128xf32>
    %cst_83 = arith.constant 1.000000e+00 : f32
    %134 = vector.broadcast %cst_83 : f32 to vector<8x128xf32>
    %135 = arith.addf %134, %133 : vector<8x128xf32>
    %136 = arith.divf %134, %135 : vector<8x128xf32>
    %137 = vector.extract_strided_slice %124 {offsets = [0, 256], sizes = [8, 128], strides = [1, 1]} : vector<8x512xf32> to vector<8x128xf32>
    %138 = math.tanh %137 : vector<8x128xf32>
    %139 = vector.extract_strided_slice %124 {offsets = [0, 384], sizes = [8, 128], strides = [1, 1]} : vector<8x512xf32> to vector<8x128xf32>
    %140 = arith.negf %139 : vector<8x128xf32>
    %141 = math.exp %140 : vector<8x128xf32>
    %cst_84 = arith.constant 1.000000e+00 : f32
    %142 = vector.broadcast %cst_84 : f32 to vector<8x128xf32>
    %143 = arith.addf %142, %141 : vector<8x128xf32>
    %144 = arith.divf %142, %143 : vector<8x128xf32>
    %145 = arith.mulf %136, %117 : vector<8x128xf32>
    %146 = arith.mulf %130, %138 : vector<8x128xf32>
    %147 = arith.addf %145, %146 : vector<8x128xf32>
    %148 = math.tanh %147 : vector<8x128xf32>
    %149 = arith.mulf %144, %148 : vector<8x128xf32>
    %c2_85 = arith.constant 2 : index
    %c0_86 = arith.constant 0 : index
    %c0_87 = arith.constant 0 : index
    %150 = vector.load %arg13[%c2_85, %c0_86, %c0_87] : memref<8x8x512xf32, #tpu.memory_space<vmem>>, vector<1x8x512xf32>
    %151 = vector.shape_cast %150 : vector<1x8x512xf32> to vector<8x512xf32>
    %c0_88 = arith.constant 0 : index
    %c0_89 = arith.constant 0 : index
    %152 = vector.load %arg5[%c0_88, %c0_89] : memref<128x512xf32, #tpu.memory_space<vmem>>, vector<128x512xf32>
    %cst_90 = arith.constant dense<0.000000e+00> : vector<8x512xf32>
    %153 = tpu.matmul %149, %152, %cst_90 {dimension_numbers = #tpu.dot_dimension_numbers<[1], [0], [0], [1], [0, 0, 1, 1], [], []>} : vector<8x128xf32>, vector<128x512xf32>, vector<8x512xf32> -> vector<8x512xf32>
    %154 = arith.addf %151, %153 : vector<8x512xf32>
    %155 = vector.extract_strided_slice %154 {offsets = [0, 0], sizes = [8, 128], strides = [1, 1]} : vector<8x512xf32> to vector<8x128xf32>
    %156 = arith.negf %155 : vector<8x128xf32>
    %157 = math.exp %156 : vector<8x128xf32>
    %cst_91 = arith.constant 1.000000e+00 : f32
    %158 = vector.broadcast %cst_91 : f32 to vector<8x128xf32>
    %159 = arith.addf %158, %157 : vector<8x128xf32>
    %160 = arith.divf %158, %159 : vector<8x128xf32>
    %161 = vector.extract_strided_slice %154 {offsets = [0, 128], sizes = [8, 128], strides = [1, 1]} : vector<8x512xf32> to vector<8x128xf32>
    %162 = arith.negf %161 : vector<8x128xf32>
    %163 = math.exp %162 : vector<8x128xf32>
    %cst_92 = arith.constant 1.000000e+00 : f32
    %164 = vector.broadcast %cst_92 : f32 to vector<8x128xf32>
    %165 = arith.addf %164, %163 : vector<8x128xf32>
    %166 = arith.divf %164, %165 : vector<8x128xf32>
    %167 = vector.extract_strided_slice %154 {offsets = [0, 256], sizes = [8, 128], strides = [1, 1]} : vector<8x512xf32> to vector<8x128xf32>
    %168 = math.tanh %167 : vector<8x128xf32>
    %169 = vector.extract_strided_slice %154 {offsets = [0, 384], sizes = [8, 128], strides = [1, 1]} : vector<8x512xf32> to vector<8x128xf32>
    %170 = arith.negf %169 : vector<8x128xf32>
    %171 = math.exp %170 : vector<8x128xf32>
    %cst_93 = arith.constant 1.000000e+00 : f32
    %172 = vector.broadcast %cst_93 : f32 to vector<8x128xf32>
    %173 = arith.addf %172, %171 : vector<8x128xf32>
    %174 = arith.divf %172, %173 : vector<8x128xf32>
    %175 = arith.mulf %166, %147 : vector<8x128xf32>
    %176 = arith.mulf %160, %168 : vector<8x128xf32>
    %177 = arith.addf %175, %176 : vector<8x128xf32>
    %178 = math.tanh %177 : vector<8x128xf32>
    %179 = arith.mulf %174, %178 : vector<8x128xf32>
    %c3_94 = arith.constant 3 : index
    %c0_95 = arith.constant 0 : index
    %c0_96 = arith.constant 0 : index
    %180 = vector.load %arg13[%c3_94, %c0_95, %c0_96] : memref<8x8x512xf32, #tpu.memory_space<vmem>>, vector<1x8x512xf32>
    %181 = vector.shape_cast %180 : vector<1x8x512xf32> to vector<8x512xf32>
    %c0_97 = arith.constant 0 : index
    %c0_98 = arith.constant 0 : index
    %182 = vector.load %arg5[%c0_97, %c0_98] : memref<128x512xf32, #tpu.memory_space<vmem>>, vector<128x512xf32>
    %cst_99 = arith.constant dense<0.000000e+00> : vector<8x512xf32>
    %183 = tpu.matmul %179, %182, %cst_99 {dimension_numbers = #tpu.dot_dimension_numbers<[1], [0], [0], [1], [0, 0, 1, 1], [], []>} : vector<8x128xf32>, vector<128x512xf32>, vector<8x512xf32> -> vector<8x512xf32>
    %184 = arith.addf %181, %183 : vector<8x512xf32>
    %185 = vector.extract_strided_slice %184 {offsets = [0, 0], sizes = [8, 128], strides = [1, 1]} : vector<8x512xf32> to vector<8x128xf32>
    %186 = arith.negf %185 : vector<8x128xf32>
    %187 = math.exp %186 : vector<8x128xf32>
    %cst_100 = arith.constant 1.000000e+00 : f32
    %188 = vector.broadcast %cst_100 : f32 to vector<8x128xf32>
    %189 = arith.addf %188, %187 : vector<8x128xf32>
    %190 = arith.divf %188, %189 : vector<8x128xf32>
    %191 = vector.extract_strided_slice %184 {offsets = [0, 128], sizes = [8, 128], strides = [1, 1]} : vector<8x512xf32> to vector<8x128xf32>
    %192 = arith.negf %191 : vector<8x128xf32>
    %193 = math.exp %192 : vector<8x128xf32>
    %cst_101 = arith.constant 1.000000e+00 : f32
    %194 = vector.broadcast %cst_101 : f32 to vector<8x128xf32>
    %195 = arith.addf %194, %193 : vector<8x128xf32>
    %196 = arith.divf %194, %195 : vector<8x128xf32>
    %197 = vector.extract_strided_slice %184 {offsets = [0, 256], sizes = [8, 128], strides = [1, 1]} : vector<8x512xf32> to vector<8x128xf32>
    %198 = math.tanh %197 : vector<8x128xf32>
    %199 = vector.extract_strided_slice %184 {offsets = [0, 384], sizes = [8, 128], strides = [1, 1]} : vector<8x512xf32> to vector<8x128xf32>
    %200 = arith.negf %199 : vector<8x128xf32>
    %201 = math.exp %200 : vector<8x128xf32>
    %cst_102 = arith.constant 1.000000e+00 : f32
    %202 = vector.broadcast %cst_102 : f32 to vector<8x128xf32>
    %203 = arith.addf %202, %201 : vector<8x128xf32>
    %204 = arith.divf %202, %203 : vector<8x128xf32>
    %205 = arith.mulf %196, %177 : vector<8x128xf32>
    %206 = arith.mulf %190, %198 : vector<8x128xf32>
    %207 = arith.addf %205, %206 : vector<8x128xf32>
    %208 = math.tanh %207 : vector<8x128xf32>
    %209 = arith.mulf %204, %208 : vector<8x128xf32>
    %c4_103 = arith.constant 4 : index
    %c0_104 = arith.constant 0 : index
    %c0_105 = arith.constant 0 : index
    %210 = vector.load %arg13[%c4_103, %c0_104, %c0_105] : memref<8x8x512xf32, #tpu.memory_space<vmem>>, vector<1x8x512xf32>
    %211 = vector.shape_cast %210 : vector<1x8x512xf32> to vector<8x512xf32>
    %c0_106 = arith.constant 0 : index
    %c0_107 = arith.constant 0 : index
    %212 = vector.load %arg5[%c0_106, %c0_107] : memref<128x512xf32, #tpu.memory_space<vmem>>, vector<128x512xf32>
    %cst_108 = arith.constant dense<0.000000e+00> : vector<8x512xf32>
    %213 = tpu.matmul %209, %212, %cst_108 {dimension_numbers = #tpu.dot_dimension_numbers<[1], [0], [0], [1], [0, 0, 1, 1], [], []>} : vector<8x128xf32>, vector<128x512xf32>, vector<8x512xf32> -> vector<8x512xf32>
    %214 = arith.addf %211, %213 : vector<8x512xf32>
    %215 = vector.extract_strided_slice %214 {offsets = [0, 0], sizes = [8, 128], strides = [1, 1]} : vector<8x512xf32> to vector<8x128xf32>
    %216 = arith.negf %215 : vector<8x128xf32>
    %217 = math.exp %216 : vector<8x128xf32>
    %cst_109 = arith.constant 1.000000e+00 : f32
    %218 = vector.broadcast %cst_109 : f32 to vector<8x128xf32>
    %219 = arith.addf %218, %217 : vector<8x128xf32>
    %220 = arith.divf %218, %219 : vector<8x128xf32>
    %221 = vector.extract_strided_slice %214 {offsets = [0, 128], sizes = [8, 128], strides = [1, 1]} : vector<8x512xf32> to vector<8x128xf32>
    %222 = arith.negf %221 : vector<8x128xf32>
    %223 = math.exp %222 : vector<8x128xf32>
    %cst_110 = arith.constant 1.000000e+00 : f32
    %224 = vector.broadcast %cst_110 : f32 to vector<8x128xf32>
    %225 = arith.addf %224, %223 : vector<8x128xf32>
    %226 = arith.divf %224, %225 : vector<8x128xf32>
    %227 = vector.extract_strided_slice %214 {offsets = [0, 256], sizes = [8, 128], strides = [1, 1]} : vector<8x512xf32> to vector<8x128xf32>
    %228 = math.tanh %227 : vector<8x128xf32>
    %229 = vector.extract_strided_slice %214 {offsets = [0, 384], sizes = [8, 128], strides = [1, 1]} : vector<8x512xf32> to vector<8x128xf32>
    %230 = arith.negf %229 : vector<8x128xf32>
    %231 = math.exp %230 : vector<8x128xf32>
    %cst_111 = arith.constant 1.000000e+00 : f32
    %232 = vector.broadcast %cst_111 : f32 to vector<8x128xf32>
    %233 = arith.addf %232, %231 : vector<8x128xf32>
    %234 = arith.divf %232, %233 : vector<8x128xf32>
    %235 = arith.mulf %226, %207 : vector<8x128xf32>
    %236 = arith.mulf %220, %228 : vector<8x128xf32>
    %237 = arith.addf %235, %236 : vector<8x128xf32>
    %238 = math.tanh %237 : vector<8x128xf32>
    %239 = arith.mulf %234, %238 : vector<8x128xf32>
    %c5_112 = arith.constant 5 : index
    %c0_113 = arith.constant 0 : index
    %c0_114 = arith.constant 0 : index
    %240 = vector.load %arg13[%c5_112, %c0_113, %c0_114] : memref<8x8x512xf32, #tpu.memory_space<vmem>>, vector<1x8x512xf32>
    %241 = vector.shape_cast %240 : vector<1x8x512xf32> to vector<8x512xf32>
    %c0_115 = arith.constant 0 : index
    %c0_116 = arith.constant 0 : index
    %242 = vector.load %arg5[%c0_115, %c0_116] : memref<128x512xf32, #tpu.memory_space<vmem>>, vector<128x512xf32>
    %cst_117 = arith.constant dense<0.000000e+00> : vector<8x512xf32>
    %243 = tpu.matmul %239, %242, %cst_117 {dimension_numbers = #tpu.dot_dimension_numbers<[1], [0], [0], [1], [0, 0, 1, 1], [], []>} : vector<8x128xf32>, vector<128x512xf32>, vector<8x512xf32> -> vector<8x512xf32>
    %244 = arith.addf %241, %243 : vector<8x512xf32>
    %245 = vector.extract_strided_slice %244 {offsets = [0, 0], sizes = [8, 128], strides = [1, 1]} : vector<8x512xf32> to vector<8x128xf32>
    %246 = arith.negf %245 : vector<8x128xf32>
    %247 = math.exp %246 : vector<8x128xf32>
    %cst_118 = arith.constant 1.000000e+00 : f32
    %248 = vector.broadcast %cst_118 : f32 to vector<8x128xf32>
    %249 = arith.addf %248, %247 : vector<8x128xf32>
    %250 = arith.divf %248, %249 : vector<8x128xf32>
    %251 = vector.extract_strided_slice %244 {offsets = [0, 128], sizes = [8, 128], strides = [1, 1]} : vector<8x512xf32> to vector<8x128xf32>
    %252 = arith.negf %251 : vector<8x128xf32>
    %253 = math.exp %252 : vector<8x128xf32>
    %cst_119 = arith.constant 1.000000e+00 : f32
    %254 = vector.broadcast %cst_119 : f32 to vector<8x128xf32>
    %255 = arith.addf %254, %253 : vector<8x128xf32>
    %256 = arith.divf %254, %255 : vector<8x128xf32>
    %257 = vector.extract_strided_slice %244 {offsets = [0, 256], sizes = [8, 128], strides = [1, 1]} : vector<8x512xf32> to vector<8x128xf32>
    %258 = math.tanh %257 : vector<8x128xf32>
    %259 = vector.extract_strided_slice %244 {offsets = [0, 384], sizes = [8, 128], strides = [1, 1]} : vector<8x512xf32> to vector<8x128xf32>
    %260 = arith.negf %259 : vector<8x128xf32>
    %261 = math.exp %260 : vector<8x128xf32>
    %cst_120 = arith.constant 1.000000e+00 : f32
    %262 = vector.broadcast %cst_120 : f32 to vector<8x128xf32>
    %263 = arith.addf %262, %261 : vector<8x128xf32>
    %264 = arith.divf %262, %263 : vector<8x128xf32>
    %265 = arith.mulf %256, %237 : vector<8x128xf32>
    %266 = arith.mulf %250, %258 : vector<8x128xf32>
    %267 = arith.addf %265, %266 : vector<8x128xf32>
    %268 = math.tanh %267 : vector<8x128xf32>
    %269 = arith.mulf %264, %268 : vector<8x128xf32>
    %c6_121 = arith.constant 6 : index
    %c0_122 = arith.constant 0 : index
    %c0_123 = arith.constant 0 : index
    %270 = vector.load %arg13[%c6_121, %c0_122, %c0_123] : memref<8x8x512xf32, #tpu.memory_space<vmem>>, vector<1x8x512xf32>
    %271 = vector.shape_cast %270 : vector<1x8x512xf32> to vector<8x512xf32>
    %c0_124 = arith.constant 0 : index
    %c0_125 = arith.constant 0 : index
    %272 = vector.load %arg5[%c0_124, %c0_125] : memref<128x512xf32, #tpu.memory_space<vmem>>, vector<128x512xf32>
    %cst_126 = arith.constant dense<0.000000e+00> : vector<8x512xf32>
    %273 = tpu.matmul %269, %272, %cst_126 {dimension_numbers = #tpu.dot_dimension_numbers<[1], [0], [0], [1], [0, 0, 1, 1], [], []>} : vector<8x128xf32>, vector<128x512xf32>, vector<8x512xf32> -> vector<8x512xf32>
    %274 = arith.addf %271, %273 : vector<8x512xf32>
    %275 = vector.extract_strided_slice %274 {offsets = [0, 0], sizes = [8, 128], strides = [1, 1]} : vector<8x512xf32> to vector<8x128xf32>
    %276 = arith.negf %275 : vector<8x128xf32>
    %277 = math.exp %276 : vector<8x128xf32>
    %cst_127 = arith.constant 1.000000e+00 : f32
    %278 = vector.broadcast %cst_127 : f32 to vector<8x128xf32>
    %279 = arith.addf %278, %277 : vector<8x128xf32>
    %280 = arith.divf %278, %279 : vector<8x128xf32>
    %281 = vector.extract_strided_slice %274 {offsets = [0, 128], sizes = [8, 128], strides = [1, 1]} : vector<8x512xf32> to vector<8x128xf32>
    %282 = arith.negf %281 : vector<8x128xf32>
    %283 = math.exp %282 : vector<8x128xf32>
    %cst_128 = arith.constant 1.000000e+00 : f32
    %284 = vector.broadcast %cst_128 : f32 to vector<8x128xf32>
    %285 = arith.addf %284, %283 : vector<8x128xf32>
    %286 = arith.divf %284, %285 : vector<8x128xf32>
    %287 = vector.extract_strided_slice %274 {offsets = [0, 256], sizes = [8, 128], strides = [1, 1]} : vector<8x512xf32> to vector<8x128xf32>
    %288 = math.tanh %287 : vector<8x128xf32>
    %289 = vector.extract_strided_slice %274 {offsets = [0, 384], sizes = [8, 128], strides = [1, 1]} : vector<8x512xf32> to vector<8x128xf32>
    %290 = arith.negf %289 : vector<8x128xf32>
    %291 = math.exp %290 : vector<8x128xf32>
    %cst_129 = arith.constant 1.000000e+00 : f32
    %292 = vector.broadcast %cst_129 : f32 to vector<8x128xf32>
    %293 = arith.addf %292, %291 : vector<8x128xf32>
    %294 = arith.divf %292, %293 : vector<8x128xf32>
    %295 = arith.mulf %286, %267 : vector<8x128xf32>
    %296 = arith.mulf %280, %288 : vector<8x128xf32>
    %297 = arith.addf %295, %296 : vector<8x128xf32>
    %298 = math.tanh %297 : vector<8x128xf32>
    %299 = arith.mulf %294, %298 : vector<8x128xf32>
    %c7_130 = arith.constant 7 : index
    %c0_131 = arith.constant 0 : index
    %c0_132 = arith.constant 0 : index
    %300 = vector.load %arg13[%c7_130, %c0_131, %c0_132] : memref<8x8x512xf32, #tpu.memory_space<vmem>>, vector<1x8x512xf32>
    %301 = vector.shape_cast %300 : vector<1x8x512xf32> to vector<8x512xf32>
    %c0_133 = arith.constant 0 : index
    %c0_134 = arith.constant 0 : index
    %302 = vector.load %arg5[%c0_133, %c0_134] : memref<128x512xf32, #tpu.memory_space<vmem>>, vector<128x512xf32>
    %cst_135 = arith.constant dense<0.000000e+00> : vector<8x512xf32>
    %303 = tpu.matmul %299, %302, %cst_135 {dimension_numbers = #tpu.dot_dimension_numbers<[1], [0], [0], [1], [0, 0, 1, 1], [], []>} : vector<8x128xf32>, vector<128x512xf32>, vector<8x512xf32> -> vector<8x512xf32>
    %304 = arith.addf %301, %303 : vector<8x512xf32>
    %305 = vector.extract_strided_slice %304 {offsets = [0, 0], sizes = [8, 128], strides = [1, 1]} : vector<8x512xf32> to vector<8x128xf32>
    %306 = arith.negf %305 : vector<8x128xf32>
    %307 = math.exp %306 : vector<8x128xf32>
    %cst_136 = arith.constant 1.000000e+00 : f32
    %308 = vector.broadcast %cst_136 : f32 to vector<8x128xf32>
    %309 = arith.addf %308, %307 : vector<8x128xf32>
    %310 = arith.divf %308, %309 : vector<8x128xf32>
    %311 = vector.extract_strided_slice %304 {offsets = [0, 128], sizes = [8, 128], strides = [1, 1]} : vector<8x512xf32> to vector<8x128xf32>
    %312 = arith.negf %311 : vector<8x128xf32>
    %313 = math.exp %312 : vector<8x128xf32>
    %cst_137 = arith.constant 1.000000e+00 : f32
    %314 = vector.broadcast %cst_137 : f32 to vector<8x128xf32>
    %315 = arith.addf %314, %313 : vector<8x128xf32>
    %316 = arith.divf %314, %315 : vector<8x128xf32>
    %317 = vector.extract_strided_slice %304 {offsets = [0, 256], sizes = [8, 128], strides = [1, 1]} : vector<8x512xf32> to vector<8x128xf32>
    %318 = math.tanh %317 : vector<8x128xf32>
    %319 = vector.extract_strided_slice %304 {offsets = [0, 384], sizes = [8, 128], strides = [1, 1]} : vector<8x512xf32> to vector<8x128xf32>
    %320 = arith.negf %319 : vector<8x128xf32>
    %321 = math.exp %320 : vector<8x128xf32>
    %cst_138 = arith.constant 1.000000e+00 : f32
    %322 = vector.broadcast %cst_138 : f32 to vector<8x128xf32>
    %323 = arith.addf %322, %321 : vector<8x128xf32>
    %324 = arith.divf %322, %323 : vector<8x128xf32>
    %325 = arith.mulf %316, %297 : vector<8x128xf32>
    %326 = arith.mulf %310, %318 : vector<8x128xf32>
    %327 = arith.addf %325, %326 : vector<8x128xf32>
    %328 = math.tanh %327 : vector<8x128xf32>
    %329 = arith.mulf %324, %328 : vector<8x128xf32>
    %c0_139 = arith.constant 0 : index
    %c7_140 = arith.constant 7 : index
    %330 = vector.load %arg1[%c0_139, %c7_140] : memref<8x8xf32, #tpu.memory_space<vmem>>, vector<8x1xf32>
    %c0_141 = arith.constant 0 : index
    %c0_142 = arith.constant 0 : index
    %331 = vector.load %arg7[%c0_141, %c0_142] : memref<1x128xf32, #tpu.memory_space<vmem>>, vector<1x128xf32>
    %332 = vector.broadcast %330 : vector<8x1xf32> to vector<8x128xf32>
    %333 = vector.broadcast %331 : vector<1x128xf32> to vector<8x128xf32>
    %334 = arith.mulf %332, %333 : vector<8x128xf32>
    %c0_143 = arith.constant 0 : index
    %c0_144 = arith.constant 0 : index
    %335 = vector.load %arg8[%c0_143, %c0_144] : memref<128x128xf32, #tpu.memory_space<vmem>>, vector<128x128xf32>
    %cst_145 = arith.constant dense<0.000000e+00> : vector<8x128xf32>
    %336 = tpu.matmul %329, %335, %cst_145 {dimension_numbers = #tpu.dot_dimension_numbers<[1], [0], [0], [1], [0, 0, 1, 1], [], []>} : vector<8x128xf32>, vector<128x128xf32>, vector<8x128xf32> -> vector<8x128xf32>
    %337 = arith.addf %334, %336 : vector<8x128xf32>
    %c0_146 = arith.constant 0 : index
    %c0_147 = arith.constant 0 : index
    %338 = vector.load %arg9[%c0_146, %c0_147] : memref<1x128xf32, #tpu.memory_space<vmem>>, vector<1x128xf32>
    %339 = vector.broadcast %338 : vector<1x128xf32> to vector<8x128xf32>
    %340 = arith.addf %337, %339 : vector<8x128xf32>
    %341 = math.tanh %340 : vector<8x128xf32>
    %c0_148 = arith.constant 0 : index
    %c0_149 = arith.constant 0 : index
    %342 = vector.load %arg10[%c0_148, %c0_149] : memref<128x128xf32, #tpu.memory_space<vmem>>, vector<128x128xf32>
    %cst_150 = arith.constant dense<0.000000e+00> : vector<8x128xf32>
    %343 = tpu.matmul %341, %342, %cst_150 {dimension_numbers = #tpu.dot_dimension_numbers<[1], [0], [0], [1], [0, 0, 1, 1], [], []>} : vector<8x128xf32>, vector<128x128xf32>, vector<8x128xf32> -> vector<8x128xf32>
    %344 = vector.extract_strided_slice %343 {offsets = [0, 0], sizes = [8, 1], strides = [1, 1]} : vector<8x128xf32> to vector<8x1xf32>
    %c0_151 = arith.constant 0 : index
    %c0_152 = arith.constant 0 : index
    %345 = vector.load %arg11[%c0_151, %c0_152] : memref<1x1xf32, #tpu.memory_space<vmem>>, vector<1x1xf32>
    %346 = vector.broadcast %345 : vector<1x1xf32> to vector<8x1xf32>
    %347 = arith.addf %344, %346 : vector<8x1xf32>
    %cst_153 = arith.constant 0.000000e+00 : f32
    %348 = vector.broadcast %cst_153 : f32 to vector<8x1xf32>
    %349 = arith.maximumf %347, %348 : vector<8x1xf32>
    %c0_154 = arith.constant 0 : index
    %c0_155 = arith.constant 0 : index
    %350 = vector.load %arg7[%c0_154, %c0_155] : memref<1x128xf32, #tpu.memory_space<vmem>>, vector<1x128xf32>
    %351 = vector.broadcast %349 : vector<8x1xf32> to vector<8x128xf32>
    %352 = vector.broadcast %350 : vector<1x128xf32> to vector<8x128xf32>
    %353 = arith.mulf %351, %352 : vector<8x128xf32>
    %c0_156 = arith.constant 0 : index
    %c0_157 = arith.constant 0 : index
    %354 = vector.load %arg8[%c0_156, %c0_157] : memref<128x128xf32, #tpu.memory_space<vmem>>, vector<128x128xf32>
    %cst_158 = arith.constant dense<0.000000e+00> : vector<8x128xf32>
    %355 = tpu.matmul %341, %354, %cst_158 {dimension_numbers = #tpu.dot_dimension_numbers<[1], [0], [0], [1], [0, 0, 1, 1], [], []>} : vector<8x128xf32>, vector<128x128xf32>, vector<8x128xf32> -> vector<8x128xf32>
    %356 = arith.addf %353, %355 : vector<8x128xf32>
    %c0_159 = arith.constant 0 : index
    %c0_160 = arith.constant 0 : index
    %357 = vector.load %arg9[%c0_159, %c0_160] : memref<1x128xf32, #tpu.memory_space<vmem>>, vector<1x128xf32>
    %358 = vector.broadcast %357 : vector<1x128xf32> to vector<8x128xf32>
    %359 = arith.addf %356, %358 : vector<8x128xf32>
    %360 = math.tanh %359 : vector<8x128xf32>
    %c0_161 = arith.constant 0 : index
    %c0_162 = arith.constant 0 : index
    %361 = vector.load %arg10[%c0_161, %c0_162] : memref<128x128xf32, #tpu.memory_space<vmem>>, vector<128x128xf32>
    %cst_163 = arith.constant dense<0.000000e+00> : vector<8x128xf32>
    %362 = tpu.matmul %360, %361, %cst_163 {dimension_numbers = #tpu.dot_dimension_numbers<[1], [0], [0], [1], [0, 0, 1, 1], [], []>} : vector<8x128xf32>, vector<128x128xf32>, vector<8x128xf32> -> vector<8x128xf32>
    %363 = vector.extract_strided_slice %362 {offsets = [0, 0], sizes = [8, 1], strides = [1, 1]} : vector<8x128xf32> to vector<8x1xf32>
    %c0_164 = arith.constant 0 : index
    %c0_165 = arith.constant 0 : index
    %364 = vector.load %arg11[%c0_164, %c0_165] : memref<1x1xf32, #tpu.memory_space<vmem>>, vector<1x1xf32>
    %365 = vector.broadcast %364 : vector<1x1xf32> to vector<8x1xf32>
    %366 = arith.addf %363, %365 : vector<8x1xf32>
    %cst_166 = arith.constant 0.000000e+00 : f32
    %367 = vector.broadcast %cst_166 : f32 to vector<8x1xf32>
    %368 = arith.maximumf %366, %367 : vector<8x1xf32>
    %c0_167 = arith.constant 0 : index
    %c0_168 = arith.constant 0 : index
    %369 = vector.load %arg7[%c0_167, %c0_168] : memref<1x128xf32, #tpu.memory_space<vmem>>, vector<1x128xf32>
    %370 = vector.broadcast %368 : vector<8x1xf32> to vector<8x128xf32>
    %371 = vector.broadcast %369 : vector<1x128xf32> to vector<8x128xf32>
    %372 = arith.mulf %370, %371 : vector<8x128xf32>
    %c0_169 = arith.constant 0 : index
    %c0_170 = arith.constant 0 : index
    %373 = vector.load %arg8[%c0_169, %c0_170] : memref<128x128xf32, #tpu.memory_space<vmem>>, vector<128x128xf32>
    %cst_171 = arith.constant dense<0.000000e+00> : vector<8x128xf32>
    %374 = tpu.matmul %360, %373, %cst_171 {dimension_numbers = #tpu.dot_dimension_numbers<[1], [0], [0], [1], [0, 0, 1, 1], [], []>} : vector<8x128xf32>, vector<128x128xf32>, vector<8x128xf32> -> vector<8x128xf32>
    %375 = arith.addf %372, %374 : vector<8x128xf32>
    %c0_172 = arith.constant 0 : index
    %c0_173 = arith.constant 0 : index
    %376 = vector.load %arg9[%c0_172, %c0_173] : memref<1x128xf32, #tpu.memory_space<vmem>>, vector<1x128xf32>
    %377 = vector.broadcast %376 : vector<1x128xf32> to vector<8x128xf32>
    %378 = arith.addf %375, %377 : vector<8x128xf32>
    %379 = math.tanh %378 : vector<8x128xf32>
    %c0_174 = arith.constant 0 : index
    %c0_175 = arith.constant 0 : index
    %380 = vector.load %arg10[%c0_174, %c0_175] : memref<128x128xf32, #tpu.memory_space<vmem>>, vector<128x128xf32>
    %cst_176 = arith.constant dense<0.000000e+00> : vector<8x128xf32>
    %381 = tpu.matmul %379, %380, %cst_176 {dimension_numbers = #tpu.dot_dimension_numbers<[1], [0], [0], [1], [0, 0, 1, 1], [], []>} : vector<8x128xf32>, vector<128x128xf32>, vector<8x128xf32> -> vector<8x128xf32>
    %382 = vector.extract_strided_slice %381 {offsets = [0, 0], sizes = [8, 1], strides = [1, 1]} : vector<8x128xf32> to vector<8x1xf32>
    %c0_177 = arith.constant 0 : index
    %c0_178 = arith.constant 0 : index
    %383 = vector.load %arg11[%c0_177, %c0_178] : memref<1x1xf32, #tpu.memory_space<vmem>>, vector<1x1xf32>
    %384 = vector.broadcast %383 : vector<1x1xf32> to vector<8x1xf32>
    %385 = arith.addf %382, %384 : vector<8x1xf32>
    %cst_179 = arith.constant 0.000000e+00 : f32
    %386 = vector.broadcast %cst_179 : f32 to vector<8x1xf32>
    %387 = arith.maximumf %385, %386 : vector<8x1xf32>
    %c0_180 = arith.constant 0 : index
    %c0_181 = arith.constant 0 : index
    %388 = vector.load %arg7[%c0_180, %c0_181] : memref<1x128xf32, #tpu.memory_space<vmem>>, vector<1x128xf32>
    %389 = vector.broadcast %387 : vector<8x1xf32> to vector<8x128xf32>
    %390 = vector.broadcast %388 : vector<1x128xf32> to vector<8x128xf32>
    %391 = arith.mulf %389, %390 : vector<8x128xf32>
    %c0_182 = arith.constant 0 : index
    %c0_183 = arith.constant 0 : index
    %392 = vector.load %arg8[%c0_182, %c0_183] : memref<128x128xf32, #tpu.memory_space<vmem>>, vector<128x128xf32>
    %cst_184 = arith.constant dense<0.000000e+00> : vector<8x128xf32>
    %393 = tpu.matmul %379, %392, %cst_184 {dimension_numbers = #tpu.dot_dimension_numbers<[1], [0], [0], [1], [0, 0, 1, 1], [], []>} : vector<8x128xf32>, vector<128x128xf32>, vector<8x128xf32> -> vector<8x128xf32>
    %394 = arith.addf %391, %393 : vector<8x128xf32>
    %c0_185 = arith.constant 0 : index
    %c0_186 = arith.constant 0 : index
    %395 = vector.load %arg9[%c0_185, %c0_186] : memref<1x128xf32, #tpu.memory_space<vmem>>, vector<1x128xf32>
    %396 = vector.broadcast %395 : vector<1x128xf32> to vector<8x128xf32>
    %397 = arith.addf %394, %396 : vector<8x128xf32>
    %398 = math.tanh %397 : vector<8x128xf32>
    %c0_187 = arith.constant 0 : index
    %c0_188 = arith.constant 0 : index
    %399 = vector.load %arg10[%c0_187, %c0_188] : memref<128x128xf32, #tpu.memory_space<vmem>>, vector<128x128xf32>
    %cst_189 = arith.constant dense<0.000000e+00> : vector<8x128xf32>
    %400 = tpu.matmul %398, %399, %cst_189 {dimension_numbers = #tpu.dot_dimension_numbers<[1], [0], [0], [1], [0, 0, 1, 1], [], []>} : vector<8x128xf32>, vector<128x128xf32>, vector<8x128xf32> -> vector<8x128xf32>
    %401 = vector.extract_strided_slice %400 {offsets = [0, 0], sizes = [8, 1], strides = [1, 1]} : vector<8x128xf32> to vector<8x1xf32>
    %c0_190 = arith.constant 0 : index
    %c0_191 = arith.constant 0 : index
    %402 = vector.load %arg11[%c0_190, %c0_191] : memref<1x1xf32, #tpu.memory_space<vmem>>, vector<1x1xf32>
    %403 = vector.broadcast %402 : vector<1x1xf32> to vector<8x1xf32>
    %404 = arith.addf %401, %403 : vector<8x1xf32>
    %cst_192 = arith.constant 0.000000e+00 : f32
    %405 = vector.broadcast %cst_192 : f32 to vector<8x1xf32>
    %406 = arith.maximumf %404, %405 : vector<8x1xf32>
    %407 = tpu.concatenate %349, %368, %387, %406 in 1 : vector<8x1xf32>, vector<8x1xf32>, vector<8x1xf32>, vector<8x1xf32> -> vector<8x4xf32>
    %c0_193 = arith.constant 0 : index
    %c0_194 = arith.constant 0 : index
    %408 = vector.load %arg12[%c0_193, %c0_194] : memref<8x4xf32, #tpu.memory_space<vmem>>, vector<8x4xf32>
    tpu.vector_store %arg12[%c0_193, %c0_194], %407 {strides = array<i32>} : memref<8x4xf32, #tpu.memory_space<vmem>>, vector<8x4xf32>,
    return
  }
  func.func @transform_0(%arg0: i32) -> (i32, i32) {
    %c0_i32 = arith.constant 0 : i32
    %c0_i32_0 = arith.constant 0 : i32
    %c0_i32_1 = arith.constant 0 : i32
    return %c0_i32, %c0_i32_0 : i32, i32
  }
  func.func @transform_1(%arg0: i32) -> (i32, i32) {
    %c0_i32 = arith.constant 0 : i32
    %c0_i32_0 = arith.constant 0 : i32
    %c0_i32_1 = arith.constant 0 : i32
    return %c0_i32, %c0_i32_0 : i32, i32
  }
  func.func @transform_2(%arg0: i32) -> (i32, i32) {
    %c0_i32 = arith.constant 0 : i32
    %c0_i32_0 = arith.constant 0 : i32
    %c0_i32_1 = arith.constant 0 : i32
    return %c0_i32, %c0_i32_0 : i32, i32
  }
  func.func @transform_3(%arg0: i32) -> (i32, i32) {
    %c0_i32 = arith.constant 0 : i32
    %c0_i32_0 = arith.constant 0 : i32
    %c0_i32_1 = arith.constant 0 : i32
    return %c0_i32, %c0_i32_0 : i32, i32
  }
  func.func @transform_4(%arg0: i32) -> (i32, i32) {
    %c0_i32 = arith.constant 0 : i32
    %c0_i32_0 = arith.constant 0 : i32
    %c0_i32_1 = arith.constant 0 : i32
    return %c0_i32, %c0_i32_0 : i32, i32
  }
  func.func @transform_5(%arg0: i32) -> (i32, i32) {
    %c0_i32 = arith.constant 0 : i32
    %c0_i32_0 = arith.constant 0 : i32
    %c0_i32_1 = arith.constant 0 : i32
    return %c0_i32, %c0_i32_0 : i32, i32
  }
  func.func @transform_6(%arg0: i32) -> (i32, i32) {
    %c0_i32 = arith.constant 0 : i32
    %c0_i32_0 = arith.constant 0 : i32
    %c0_i32_1 = arith.constant 0 : i32
    return %c0_i32, %c0_i32_0 : i32, i32
  }
  func.func @transform_7(%arg0: i32) -> (i32, i32) {
    %c0_i32 = arith.constant 0 : i32
    %c0_i32_0 = arith.constant 0 : i32
    %c0_i32_1 = arith.constant 0 : i32
    return %c0_i32, %c0_i32_0 : i32, i32
  }
  func.func @transform_8(%arg0: i32) -> (i32, i32) {
    %c0_i32 = arith.constant 0 : i32
    %c0_i32_0 = arith.constant 0 : i32
    %c0_i32_1 = arith.constant 0 : i32
    return %c0_i32, %c0_i32_0 : i32, i32
  }
  func.func @transform_9(%arg0: i32) -> (i32, i32) {
    %c0_i32 = arith.constant 0 : i32
    %c0_i32_0 = arith.constant 0 : i32
    %c0_i32_1 = arith.constant 0 : i32
    return %c0_i32, %c0_i32_0 : i32, i32
  }
  func.func @transform_10(%arg0: i32) -> (i32, i32) {
    %c0_i32 = arith.constant 0 : i32
    %c0_i32_0 = arith.constant 0 : i32
    %c0_i32_1 = arith.constant 0 : i32
    return %c0_i32, %c0_i32_0 : i32, i32
  }
  func.func @transform_11(%arg0: i32) -> (i32, i32) {
    %c0_i32 = arith.constant 0 : i32
    %c0_i32_0 = arith.constant 0 : i32
    %c0_i32_1 = arith.constant 0 : i32
    return %c0_i32, %c0_i32_0 : i32, i32
  }
}

</mosaic_0001>

<bundles_post_ra>
// kernel: tpu_custom_call.1
= control target key start
LH: loop header
LB: loop body
LE: loop exit
PB: predicated region body
PF: predicated region fallthrough
CT: control target
= control target key end

     0   :  { %s5060_s0 = inlined_call_operand.hbm [shape: f32[8,8], index: 0, kind: input, shape index: {}]   ;;  %s5061_s1 = inlined_call_operand.hbm [shape: f32[8,128], index: 1, kind: input, shape index: {}]   ;;  %s5062_s2 = inlined_call_operand.vmem [shape: f32[8,128], index: 2, kind: input, shape index: {}]   ;;  %s5063_s3 = inlined_call_operand.vmem [shape: f32[1,512], index: 3, kind: input, shape index: {}]   ;;  %s5064_s4 = inlined_call_operand.hbm [shape: f32[128,512], index: 4, kind: input, shape index: {}]   ;;  %s5065_s5 = inlined_call_operand.vmem [shape: f32[1,512], index: 5, kind: input, shape index: {}]   ;;  %s5066_s6 = inlined_call_operand.vmem [shape: f32[1,128], index: 6, kind: input, shape index: {}]   ;;  %s5067_s7 = inlined_call_operand.hbm [shape: f32[128,128], index: 7, kind: input, shape index: {}]   ;;  %s5068_s8 = inlined_call_operand.vmem [shape: f32[1,128], index: 8, kind: input, shape index: {}]   ;;  %s5069_s9 = inlined_call_operand.hbm [shape: f32[128,128], index: 9, kind: input, shape index: {}]   ;;  %s5070_s10 = inlined_call_operand.<no memory space> [shape: f32[1,1], index: 10, kind: input, shape index: {}]   ;;  %s5071_s11 = inlined_call_operand.vmem [shape: f32[8,4], index: 11, kind: output, shape index: {}]  }
   0x1   :  { %v16_v0 = vstv %s5070_s10 }
   0x2   :  { %17 = vst [vmem:[#allocation3] sm:$0x1] %v16_v0 }
   0x3   :  { %18 = vsyncpa [#allocation5], 0 }
   0x4   :  { %19 = vsyncpa [#allocation7], 0 }
   0x5   :  { %20 = vsyncpa [#allocation10], 0  ;;  %s4181_s19 = smov [#allocation6]   ;;  %s4182_s21 = smov [#allocation9]  }
   0x6   :  { %s37_s20 = sshll.u32 %s4181_s19, 4  ;;  %s66_s22 = sshll.u32 %s4182_s21, 4  ;;  %s38_s20 = int_to_ptr.vmem [resolvable:$true] %s37_s20  ;;  %s4267_s22 = int_to_ptr.vmem [resolvable:$true] %s66_s22 }
   0x7   :  { %s4065_s25 = scalar_lea.hbm %s5061_s1, 128 }
   0x8   :  { %p4066_p0 = scmp.ne.s32.totalorder %s5061_s1, %s4065_s25  ;;  %p4069_p1 = scmp.lt.u32.totalorder %s4065_s25, %s5061_s1 }
   0xa   :  { %p4071_p2 = pnand %p4069_p1, %p4066_p0 }
   0xc   :  { %4074 = shalt.err (!%p4071_p2)
}
   0xd   :  { %s4075_s29 = scalar_lea.vmem %s38_s20, 128  ;;  %p4080_p4 = scmp.lt.s32.totalorder %s38_s20, %s38_s20 }
   0xe   :  { %p4076_p3 = scmp.ne.s32.totalorder %s38_s20, %s4075_s29  ;;  %p4081_p5 = scmp.lt.s32.totalorder %s4075_s29, %s4075_s29 }
  0x10   :  { %p4082_p6 = por %p4081_p5, %p4080_p4 }
  0x12   :  { %p4083_p7 = pnand %p4082_p6, %p4076_p3 }
  0x14   :  { %4086 = shalt.err (!%p4083_p7)
}
  0x15   :  { %40 = dma.hbm_to_vmem [thread:$0]  %s5061_s1, 128, %s38_s20, [#allocation7]  }
  0x16   :  { %s4087_s15 = scalar_lea.hbm %s5067_s7, 2048 }
  0x17   :  { %p4088_p8 = scmp.ne.s32.totalorder %s5067_s7, %s4087_s15  ;;  %p4091_p9 = scmp.lt.u32.totalorder %s4087_s15, %s5067_s7 }
  0x19   :  { %p4093_p10 = pnand %p4091_p9, %p4088_p8 }
  0x1b   :  { %4096 = shalt.err (!%p4093_p10)
}
  0x1c   :  { %s4097_s21 = scalar_lea.vmem %s4267_s22, 2048  ;;  %p4102_p12 = scmp.lt.s32.totalorder %s4267_s22, %s4267_s22 }
  0x1d   :  { %p4098_p11 = scmp.ne.s32.totalorder %s4267_s22, %s4097_s21  ;;  %p4103_p13 = scmp.lt.s32.totalorder %s4097_s21, %s4097_s21 }
  0x1f   :  { %p4104_p0 = por %p4103_p13, %p4102_p12 }
  0x21   :  { %p4105_p1 = pnand %p4104_p0, %p4098_p11 }
  0x23   :  { %4108 = shalt.err (!%p4105_p1)
}
  0x24   :  { %s4183_s1 = smov 128   ;;  %s4184_s20 = smov 8  }
  0x25   :  { %72 = dma.hbm_to_vmem [thread:$0]  %s5067_s7, 2048, %s4267_s22, [#allocation10], %s4183_s1, %s4183_s1, %s4184_s20  }
  0x26   :  { %s4185_s25 = smov [#allocation4]   ;;  %s4186_s27 = smov [#allocation8]  }
  0x27   :  { %s27_s26 = sshll.u32 %s4185_s25, 4  ;;  %s50_s10 = sshll.u32 %s4186_s27, 4  ;;  %s28_s26 = int_to_ptr.vmem [resolvable:$true] %s27_s26  ;;  %s4301_s10 = int_to_ptr.vmem [resolvable:$true] %s50_s10 }
  0x28   :  { %s4109_s30 = scalar_lea.hbm %s5060_s0, 128 }
  0x29   :  { %p4110_p2 = scmp.ne.s32.totalorder %s5060_s0, %s4109_s30  ;;  %p4113_p3 = scmp.lt.u32.totalorder %s4109_s30, %s5060_s0 }
  0x2b   :  { %p4115_p4 = pnand %p4113_p3, %p4110_p2 }
  0x2d   :  { %4118 = shalt.err (!%p4115_p4)
}
  0x2e   :  { %s4119_s7 = scalar_lea.vmem %s28_s26, 128  ;;  %p4124_p6 = scmp.lt.s32.totalorder %s28_s26, %s28_s26 }
  0x2f   :  { %p4120_p5 = scmp.ne.s32.totalorder %s28_s26, %s4119_s7  ;;  %p4125_p7 = scmp.lt.s32.totalorder %s4119_s7, %s4119_s7 }
  0x31   :  { %p4126_p8 = por %p4125_p7, %p4124_p6 }
  0x33   :  { %p4127_p9 = pnand %p4126_p8, %p4120_p5 }
  0x35   :  { %4130 = shalt.err (!%p4127_p9)
}
  0x36   :  { %30 = dma.hbm_to_vmem [thread:$0]  %s5060_s0, 128, %s28_s26, [#allocation5]  }
  0x37   :  { %s4131_s19 = scalar_lea.hbm %s5064_s4, 8192 }
  0x38   :  { %p4132_p10 = scmp.ne.s32.totalorder %s5064_s4, %s4131_s19  ;;  %p4135_p11 = scmp.lt.u32.totalorder %s4131_s19, %s5064_s4 }
  0x3a   :  { %p4137_p12 = pnand %p4135_p11, %p4132_p10 }
  0x3c   :  { %4140 = shalt.err (!%p4137_p12)
}
  0x3d   :  { %s4141_s27 = scalar_lea.vmem %s4301_s10, 8192  ;;  %p4146_p0 = scmp.lt.s32.totalorder %s4301_s10, %s4301_s10 }
  0x3e   :  { %p4142_p13 = scmp.ne.s32.totalorder %s4301_s10, %s4141_s27  ;;  %p4147_p1 = scmp.lt.s32.totalorder %s4141_s27, %s4141_s27 }
  0x40   :  { %p4148_p2 = por %p4147_p1, %p4146_p0 }
  0x42   :  { %p4149_p3 = pnand %p4148_p2, %p4142_p13 }
  0x44   :  { %4152 = shalt.err (!%p4149_p3)
}
  0x45   :  { %s4187_s0 = smov 512   ;;  %s4188_s26 = smov 32  }
  0x46   :  { %56 = dma.hbm_to_vmem [thread:$0]  %s5064_s4, 8192, %s4301_s10, [#allocation7], %s4187_s0, %s4187_s0, %s4188_s26  }
  0x47   :  { %s4189_s30 = smov [#allocation11]   ;;  %s4153_s15 = scalar_lea.hbm %s5069_s9, 2048 }
  0x48   :  { %s80_s12 = sshll.u32 %s4189_s30, 4  ;;  %p4154_p4 = scmp.ne.s32.totalorder %s5069_s9, %s4153_s15  ;;  %s81_s12 = int_to_ptr.vmem [resolvable:$true] %s80_s12 }
  0x49   :  { %p4157_p5 = scmp.lt.u32.totalorder %s4153_s15, %s5069_s9 }
  0x4b   :  { %p4159_p6 = pnand %p4157_p5, %p4154_p4 }
  0x4d   :  { %4162 = shalt.err (!%p4159_p6)
}
  0x4e   :  { %s4163_s18 = scalar_lea.vmem %s81_s12, 2048  ;;  %p4168_p8 = scmp.lt.s32.totalorder %s81_s12, %s81_s12 }
  0x4f   :  { %p4164_p7 = scmp.ne.s32.totalorder %s81_s12, %s4163_s18  ;;  %p4169_p9 = scmp.lt.s32.totalorder %s4163_s18, %s4163_s18 }
  0x51   :  { %p4170_p10 = por %p4169_p9, %p4168_p8 }
  0x53   :  { %p4171_p11 = pnand %p4170_p10, %p4164_p7 }
  0x55   :  { %4174 = shalt.err (!%p4171_p11)
}
  0x56   :  { %86 = dma.hbm_to_vmem [thread:$0]  %s5069_s9, 2048, %s81_s12, [#allocation10], %s4183_s1, %s4183_s1, %s4184_s20  }
  0x57   :  { %4175 = dma.done.wait [#allocation5], 128  }
  0x58   :  { %4176 = vsyncadd [#allocation5], 4294967168 }
  0x59   :  { %4177 = dma.done.wait [#allocation7], 8320  }
  0x5a   :  { %4178 = vsyncadd [#allocation7], 4294958976 }
  0x5b   :  { %4179 = dma.done.wait [#allocation10], 4096  }
  0x5c   :  { %4180 = vsyncadd [#allocation10], 4294963200  ;;  %v4190_v1 = vmov 0.0   ;;  %v5072_v2 = vmov 0   ;;  %v614_v3 = vld [vmem:[#allocation8 + $0x8] sm:$0xff]  ;;  %v616_v5 = vld [vmem:[#allocation8 + $0x18] sm:$0xff] }
  0x5d   :  { %741 = vmatprep.mubr.f32.mxu0 %v4190_v1  ;;  %812 = vmatprep.mubr.f32.mxu1 %v4190_v1  ;;  %v618_v4 = vld [vmem:[#allocation8 + $0x28] sm:$0xff]  ;;  %v620_v7 = vld [vmem:[#allocation8 + $0x38] sm:$0xff]  ;;  %v613_v8 = vld [vmem:[#allocation8] sm:$0xff]  ;;  %vm4200_vm0 = vmmov 0   ;;  %s4203_s0 = smov 3   ;;  %vm2733_vm1 = vcmask 7168  }
  0x5e   :  { %3918 = vset.pattern.permute.xlu0 %v5072_v2  ;;  %v4350_v6 = vpack.c.bf16 %v618_v4, %v614_v3  ;;  %v617_v9 = vld [vmem:[#allocation8 + $0x20] sm:$0xff]  ;;  %v4352_v10 = vpack.c.bf16 %v620_v7, %v616_v5  ;;  %v615_v12 = vld [vmem:[#allocation8 + $0x10] sm:$0xff]  ;;  %v622_v14 = vld [vmem:[#allocation8 + $0x48] sm:$0xff]  ;;  %vm2735_vm2 = vcmask 15360   ;;  %vm2737_vm3 = vcmask 23552  }
  0x5f   :  { %v4354_v11 = vpack.c.bf16 %v617_v9, %v613_v8  ;;  %v619_v13 = vld [vmem:[#allocation8 + $0x30] sm:$0xff]  ;;  %v626_v16 = vld [vmem:[#allocation8 + $0x68] sm:$0xff]  ;;  %v624_v17 = vld [vmem:[#allocation8 + $0x58] sm:$0xff]  ;;  %vm2739_vm4 = vcmask 31744  }
  0x60   :  { %3192 = vmatprep.subr.bf16.mxu0 %v4350_v6  ;;  %v4357_v15 = vpack.c.bf16 %v619_v13, %v615_v12  ;;  %v628_v18 = vld [vmem:[#allocation8 + $0x78] sm:$0xff]  ;;  %3224 = vmatprep.subr.bf16.mxu1 %v4352_v10  ;;  %v4361_v19 = vpack.c.bf16 %v626_v16, %v622_v14  ;;  %v621_v21 = vld [vmem:[#allocation8 + $0x40] sm:$0xff]  ;;  %v623_v23 = vld [vmem:[#allocation8 + $0x50] sm:$0xff] }
  0x61   :  { %3194 = vmatpush1.bf16.msra.mxu0 %v4354_v11  ;;  %v4363_v20 = vpack.c.bf16 %v628_v18, %v624_v17  ;;  %v625_v22 = vld [vmem:[#allocation8 + $0x60] sm:$0xff]  ;;  %v627_v25 = vld [vmem:[#allocation8 + $0x70] sm:$0xff]  ;;  %v630_v26 = vld [vmem:[#allocation8 + $0x88] sm:$0xff] }
  0x62   :  { %3226 = vmatpush1.bf16.msra.mxu1 %v4357_v15  ;;  %v4366_v24 = vpack.c.bf16 %v625_v22, %v621_v21  ;;  %v634_v27 = vld [vmem:[#allocation8 + $0xa8] sm:$0xff]  ;;  %3196 = vmatprep.subr.bf16.mxu0 %v4361_v19  ;;  %v4370_v28 = vpack.c.bf16 %v627_v25, %v623_v23  ;;  %v632_v30 = vld [vmem:[#allocation8 + $0x98] sm:$0xff]  ;;  %v629_v32 = vld [vmem:[#allocation8 + $0x80] sm:$0xff] }
  0x63   :  { %3228 = vmatprep.subr.bf16.mxu1 %v4363_v20  ;;  %v4372_v29 = vpack.c.bf16 %v634_v27, %v630_v26  ;;  %v636_v31 = vld [vmem:[#allocation8 + $0xb8] sm:$0xff]  ;;  %v633_v34 = vld [vmem:[#allocation8 + $0xa0] sm:$0xff]  ;;  %v631_v35 = vld [vmem:[#allocation8 + $0x90] sm:$0xff] }
  0x64   :  { %v4374_v33 = vpack.c.bf16 %v636_v31, %v632_v30  ;;  %v635_v36 = vld [vmem:[#allocation8 + $0xb0] sm:$0xff]  ;;  %v4377_v37 = vpack.c.bf16 %v633_v34, %v629_v32  ;;  %v638_v38 = vld [vmem:[#allocation8 + $0xc8] sm:$0xff]  ;;  %v640_v40 = vld [vmem:[#allocation8 + $0xd8] sm:$0xff] }
  0x65   :  { %3198 = vmatpush1.bf16.msra.mxu0 %v4366_v24  ;;  %v642_v39 = vld [vmem:[#allocation8 + $0xe8] sm:$0xff]  ;;  %v4381_v41 = vpack.c.bf16 %v635_v36, %v631_v35  ;;  %v644_v43 = vld [vmem:[#allocation8 + $0xf8] sm:$0xff]  ;;  %v637_v44 = vld [vmem:[#allocation8 + $0xc0] sm:$0xff] }
  0x66   :  { %3230 = vmatpush1.bf16.msra.mxu1 %v4370_v28  ;;  %3200 = vmatprep.subr.bf16.mxu0 %v4372_v29  ;;  %v4383_v42 = vpack.c.bf16 %v642_v39, %v638_v38  ;;  %v641_v45 = vld [vmem:[#allocation8 + $0xe0] sm:$0xff]  ;;  %v4386_v46 = vpack.c.bf16 %v644_v43, %v640_v40  ;;  %v639_v47 = vld [vmem:[#allocation8 + $0xd0] sm:$0xff]  ;;  %v646_v49 = vld [vmem:[#allocation8 + $0x108] sm:$0xff] }
  0x67   :  { %3232 = vmatprep.subr.bf16.mxu1 %v4374_v33  ;;  %v643_v48 = vld [vmem:[#allocation8 + $0xf0] sm:$0xff]  ;;  %v650_v50 = vld [vmem:[#allocation8 + $0x128] sm:$0xff]  ;;  %v648_v51 = vld [vmem:[#allocation8 + $0x118] sm:$0xff]  ;;  %v4389_v53 = vpack.c.bf16 %v641_v45, %v637_v44 }
  0x68   :  { %v652_v52 = vld [vmem:[#allocation8 + $0x138] sm:$0xff]  ;;  %v4393_v54 = vpack.c.bf16 %v643_v48, %v639_v47  ;;  %v4395_v55 = vpack.c.bf16 %v650_v50, %v646_v49  ;;  %v645_v56 = vld [vmem:[#allocation8 + $0x100] sm:$0xff]  ;;  %v647_v58 = vld [vmem:[#allocation8 + $0x110] sm:$0xff] }
  0x69   :  { %3202 = vmatpush1.bf16.msra.mxu0 %v4377_v37  ;;  %v649_v57 = vld [vmem:[#allocation8 + $0x120] sm:$0xff]  ;;  %v4398_v59 = vpack.c.bf16 %v652_v52, %v648_v51  ;;  %v651_v60 = vld [vmem:[#allocation8 + $0x130] sm:$0xff]  ;;  %v654_v61 = vld [vmem:[#allocation8 + $0x148] sm:$0xff] }
  0x6a   :  { %3234 = vmatpush1.bf16.msra.mxu1 %v4381_v41  ;;  %3204 = vmatprep.subr.bf16.mxu0 %v4383_v42  ;;  %v658_v62 = vld [vmem:[#allocation8 + $0x168] sm:$0xff]  ;;  %v656_v63 = vld [vmem:[#allocation8 + $0x158] sm:$0xff]  ;;  %v4401_v3 = vpack.c.bf16 %v649_v57, %v645_v56  ;;  %v4405_v4 = vpack.c.bf16 %v651_v60, %v647_v58  ;;  %v653_v7 = vld [vmem:[#allocation8 + $0x140] sm:$0xff]  ;;  %v4192_v56 = vmov 1   ;;  %v112_v57 = vlaneseq }
  0x6b   :  { %3236 = vmatprep.subr.bf16.mxu1 %v4386_v46  ;;  %v660_v0 = vld [vmem:[#allocation8 + $0x178] sm:$0xff]  ;;  %v4407_v5 = vpack.c.bf16 %v658_v62, %v654_v61  ;;  %v657_v8 = vld [vmem:[#allocation8 + $0x160] sm:$0xff]  ;;  %v655_v9 = vld [vmem:[#allocation8 + $0x150] sm:$0xff] }
  0x6c   :  { %v4410_v12 = vpack.c.bf16 %v660_v0, %v656_v63  ;;  %v659_v13 = vld [vmem:[#allocation8 + $0x170] sm:$0xff]  ;;  %v662_v14 = vld [vmem:[#allocation8 + $0x188] sm:$0xff]  ;;  %v664_v17 = vld [vmem:[#allocation8 + $0x198] sm:$0xff]  ;;  %v4413_v21 = vpack.c.bf16 %v657_v8, %v653_v7  ;;  %v113_v58 = vshrl.u32 %v112_v57, 7 }
  0x6d   :  { %3206 = vmatpush1.bf16.msra.mxu0 %v4389_v53  ;;  %v666_v16 = vld [vmem:[#allocation8 + $0x1a8] sm:$0xff]  ;;  %v668_v18 = vld [vmem:[#allocation8 + $0x1b8] sm:$0xff]  ;;  %v661_v22 = vld [vmem:[#allocation8 + $0x180] sm:$0xff]  ;;  %v4417_v23 = vpack.c.bf16 %v659_v13, %v655_v9 }
  0x6e   :  { %3238 = vmatpush1.bf16.msra.mxu1 %v4393_v54  ;;  %3208 = vmatprep.subr.bf16.mxu0 %v4395_v55  ;;  %v4419_v25 = vpack.c.bf16 %v666_v16, %v662_v14  ;;  %v665_v26 = vld [vmem:[#allocation8 + $0x1a0] sm:$0xff]  ;;  %v663_v27 = vld [vmem:[#allocation8 + $0x190] sm:$0xff]  ;;  %v4424_v31 = vpack.c.bf16 %v668_v18, %v664_v17  ;;  %v670_v34 = vld [vmem:[#allocation8 + $0x1c8] sm:$0xff]  ;;  %v4486_v60 = vsub.s32 0, %v113_v58  ;;  %v4491_v62 = vsub.s32 1, %v113_v58 }
  0x6f   :  { %3240 = vmatprep.subr.bf16.mxu1 %v4398_v59  ;;  %v4421_v30 = vld [vmem:[#allocation4] sm:$0xff]  ;;  %v674_v35 = vld [vmem:[#allocation8 + $0x1e8] sm:$0xff]  ;;  %v672_v36 = vld [vmem:[#allocation8 + $0x1d8] sm:$0xff]  ;;  %v4428_v39 = vpack.c.bf16 %v665_v26, %v661_v22  ;;  %v4498_v9 = vsub.s32 3, %v113_v58  ;;  %v4503_v26 = vsub.s32 2, %v113_v58 }
  0x70   :  { %v667_v32 = vld [vmem:[#allocation8 + $0x1b0] sm:$0xff]  ;;  %108 = vperm.xlu0 %3918, %v4421_v30   ;;  %v676_v38 = vld [vmem:[#allocation8 + $0x1f8] sm:$0xff]  ;;  %v4434_v43 = vpack.c.bf16 %v674_v35, %v670_v34  ;;  %v669_v44 = vld [vmem:[#allocation8 + $0x1c0] sm:$0xff] }
  0x71   :  { %3210 = vmatpush1.bf16.msra.mxu0 %v4401_v3  ;;  %v4432_v40 = vpack.c.bf16 %v667_v32, %v663_v27  ;;  %v673_v45 = vld [vmem:[#allocation8 + $0x1e0] sm:$0xff]  ;;  %v4437_v47 = vpack.c.bf16 %v676_v38, %v672_v36  ;;  %v671_v48 = vld [vmem:[#allocation8 + $0x1d0] sm:$0xff]  ;;  %v607_v52 = vld [vmem:[#allocation6] sm:$0xff] }
  0x72   :  { %3242 = vmatpush1.bf16.msra.mxu1 %v4405_v4  ;;  %3212 = vmatprep.subr.bf16.mxu0 %v4407_v5  ;;  %v675_v49 = vld [vmem:[#allocation8 + $0x1f0] sm:$0xff]  ;;  %v4440_v50 = vpack.c.bf16 %v673_v45, %v669_v44 }
  0x73   :  { %3244 = vmatprep.subr.bf16.mxu1 %v4410_v12  ;;  %v4444_v51 = vpack.c.bf16 %v675_v49, %v671_v48  ;;  %v105_v61 = vld [vmem:[%s5063_s3] sm:$0xf] }
  0x74   :  { %3919 = vset.pattern.permute.xlu0 %v4192_v56  ;;  %v115_v63 = vrot.slane %v105_v61, %v4486_v60  ;;  %v136_v7 = vld [vmem:[%s5065_s5] sm:$0xf]  ;;  %v119_v8 = vrot.slane %v105_v61, %v4491_v62  ;;  %v127_v18 = vrot.slane %v105_v61, %v4498_v9  ;;  %v123_v38 = vrot.slane %v105_v61, %v4503_v26 }
  0x75   :  { %3214 = vmatpush1.bf16.msra.mxu0 %v4413_v21  ;;  %170 = vperm.xlu0 %3919, %v4421_v30   ;;  %v141_v14 = vrot.slane %v136_v7, %v4486_v60  ;;  %v145_v17 = vrot.slane %v136_v7, %v4491_v62  ;;  %v153_v35 = vrot.slane %v136_v7, %v4498_v9 }
  0x76   :  { %3246 = vmatpush1.bf16.msra.mxu1 %v4417_v23  ;;  %3216 = vmatprep.subr.bf16.mxu0 %v4419_v25  ;;  %v149_v58 = vrot.slane %v136_v7, %v4503_v26 }
  0x77   :  { %3248 = vmatprep.subr.bf16.mxu1 %v4424_v31 }
  0x79   :  { %3218 = vmatpush1.bf16.msra.mxu0 %v4428_v39 }
  0x7a   :  { %3250 = vmatpush1.bf16.msra.mxu1 %v4432_v40  ;;  %3220 = vmatprep.subr.bf16.mxu0 %v4434_v43 }
  0x7b   :  { %3252 = vmatprep.subr.bf16.mxu1 %v4437_v47 }
  0x7d   :  { %3222 = vmatpush1.bf16.msra.mxu0 %v4440_v50 }
  0x7e   :  { %3254 = vmatpush1.bf16.msra.mxu1 %v4444_v51  ;;  %3256 = vmatprep.subr.bf16.mxu0 %v4350_v6 }
  0x7f   :  { %3288 = vmatprep.subr.bf16.mxu1 %v4352_v10 }
  0x80   :  { %742 = vmatmul.mubr.f32.vlgmr.msra.gmra.mrb[0].mxu0 %v607_v52 }
  0x81   :  { %813 = vmatmul.mubr.f32.vlgmr.msra.gmra.mrb[0].mxu1 %v607_v52  ;;  %3258 = vmatpush1.bf16.msra.mxu0 %v4354_v11 }
  0x82   :  { %3290 = vmatpush1.bf16.msra.mxu1 %v4357_v15  ;;  %3260 = vmatprep.subr.bf16.mxu0 %v4361_v19 }
  0x83   :  { %3292 = vmatprep.subr.bf16.mxu1 %v4363_v20  ;;  %915 = vmatprep.mubr.f32.mxu0 %v4190_v1 }
  0x84   :  { %986 = vmatprep.mubr.f32.mxu1 %v4190_v1 }
  0x85   :  { %3262 = vmatpush1.bf16.msra.mxu0 %v4366_v24 }
  0x86   :  { %3294 = vmatpush1.bf16.msra.mxu1 %v4370_v28  ;;  %3264 = vmatprep.subr.bf16.mxu0 %v4372_v29 }
  0x87   :  { %3296 = vmatprep.subr.bf16.mxu1 %v4374_v33 }
  0x89   :  { %3266 = vmatpush1.bf16.msra.mxu0 %v4377_v37 }
  0x8a   :  { %3298 = vmatpush1.bf16.msra.mxu1 %v4381_v41  ;;  %3268 = vmatprep.subr.bf16.mxu0 %v4383_v42 }
  0x8b   :  { %3300 = vmatprep.subr.bf16.mxu1 %v4386_v46 }
  0x8d   :  { %3270 = vmatpush1.bf16.msra.mxu0 %v4389_v53 }
  0x8e   :  { %3302 = vmatpush1.bf16.msra.mxu1 %v4393_v54  ;;  %3272 = vmatprep.subr.bf16.mxu0 %v4395_v55 }
  0x8f   :  { %3304 = vmatprep.subr.bf16.mxu1 %v4398_v59 }
  0x91   :  { %3274 = vmatpush1.bf16.msra.mxu0 %v4401_v3 }
  0x92   :  { %3306 = vmatpush1.bf16.msra.mxu1 %v4405_v4  ;;  %3276 = vmatprep.subr.bf16.mxu0 %v4407_v5 }
  0x93   :  { %3308 = vmatprep.subr.bf16.mxu1 %v4410_v12 }
  0x95   :  { %3278 = vmatpush1.bf16.msra.mxu0 %v4413_v21 }
  0x96   :  { %3310 = vmatpush1.bf16.msra.mxu1 %v4417_v23  ;;  %3280 = vmatprep.subr.bf16.mxu0 %v4419_v25 }
  0x97   :  { %3312 = vmatprep.subr.bf16.mxu1 %v4424_v31 }
  0x99   :  { %3282 = vmatpush1.bf16.msra.mxu0 %v4428_v39 }
  0x9a   :  { %3314 = vmatpush1.bf16.msra.mxu1 %v4432_v40  ;;  %3284 = vmatprep.subr.bf16.mxu0 %v4434_v43 }
  0x9b   :  { %3316 = vmatprep.subr.bf16.mxu1 %v4437_v47 }
  0x9d   :  { %3286 = vmatpush1.bf16.msra.mxu0 %v4440_v50 }
  0x9e   :  { %3318 = vmatpush1.bf16.msra.mxu1 %v4444_v51  ;;  %3320 = vmatprep.subr.bf16.mxu0 %v4350_v6 }
  0x9f   :  { %3352 = vmatprep.subr.bf16.mxu1 %v4352_v10 }
  0xef   :  { %v109_v0 = vpop.permute.xlu0 %108 }
  0xf0   :  { %v132_v13 = vmul.f32 %v115_v63, %v109_v0  ;;  %v133_v16 = vmul.f32 %v119_v8, %v109_v0  ;;  %v135_v34 = vmul.f32 %v127_v18, %v109_v0  ;;  %v134_v63 = vmul.f32 %v123_v38, %v109_v0  ;;  %v608_v0 = vld [vmem:[%s5062_s2] sm:$0xff] }
  0xf2   :  { %v158_v22 = vadd.f32 %v141_v14, %v132_v13  ;;  %v159_v27 = vadd.f32 %v145_v17, %v133_v16  ;;  %v161_v57 = vadd.f32 %v153_v35, %v135_v34  ;;  %v160_v13 = vadd.f32 %v149_v58, %v134_v63  ;;  %v198_v58 = vld [vmem:[%s5065_s5] sm:$0xf] }
  0xf4   :  { %v171_v63 = vpop.permute.xlu0 %170 }
 0x153   :  { %v743_v32 = vpop.f32.mrb[0].mxu0 }
 0x154   :  { %v819_v36 = vadd.f32 %v743_v32, %v158_v22  ;;  %v814_v44 = vpop.f32.mrb[0].mxu1  ;;  %v745_v45 = vpop.f32.mrb[1].mxu0 }
 0x155   :  { %v820_v48 = vadd.f32 %v745_v45, %v159_v27  ;;  %v816_v49 = vpop.f32.mrb[1].mxu1  ;;  %v821_v16 = vadd.f32 %v814_v44, %v160_v13 }
 0x156   :  { %v2748_v52 = vmul.f32 -1.442695, %v819_v36  ;;  %v822_v8 = vadd.f32 %v816_v49, %v161_v57 }
 0x157   :  { %v2749_v56 = vmul.f32 -1.442695, %v820_v48 }
 0x158   :  { %3929 = vpow2.f32 %v2748_v52  ;;  %v2750_v14 = vmul.f32 -1.442695, %v822_v8  ;;  %v4193_v52 = vmov 2  }
 0x159   :  { %3931 = vpow2.f32 %v2749_v56  ;;  %3920 = vset.pattern.permute.xlu1 %v4193_v52  ;;  %v167_v56 = vld [vmem:[%s5063_s3] sm:$0xf] }
 0x15a   :  { %3933 = vpow2.f32 %v2750_v14  ;;  %233 = vperm.xlu1 %3920, %v4421_v30   ;;  %v177_v57 = vrot.slane %v167_v56, %v4486_v60  ;;  %v181_v8 = vrot.slane %v167_v56, %v4491_v62  ;;  %v203_v14 = vrot.slane %v198_v58, %v4486_v60 }
 0x15b   :  { %3935 = vtanh.f32 %v821_v16 }
 0x15c   :  { %v194_v13 = vmul.f32 %v177_v57, %v171_v63  ;;  %v195_v16 = vmul.f32 %v181_v8, %v171_v63  ;;  %v211_v8 = vrot.slane %v198_v58, %v4503_v26 }
 0x162   :  { %v3930_v17 = vpop.eup %3929 }
 0x163   :  { %v3932_v18 = vpop.eup %3931  ;;  %v826_v22 = vadd.f32 1.0, %v3930_v17  ;;  %v207_v17 = vrot.slane %v198_v58, %v4491_v62 }
 0x164   :  { %v832_v61 = vadd.f32 1.0, %v3932_v18  ;;  %v3934_v27 = vpop.eup %3933  ;;  %v189_v18 = vrot.slane %v167_v56, %v4498_v9 }
 0x165   :  { %3937 = vrcp.f32 %v826_v22  ;;  %v3936_v32 = vpop.eup %3935  ;;  %v839_v36 = vadd.f32 1.0, %v3934_v27  ;;  %v220_v22 = vadd.f32 %v203_v14, %v194_v13 }
 0x166   :  { %3939 = vrcp.f32 %v832_v61  ;;  %v221_v61 = vadd.f32 %v207_v17, %v195_v16 }
 0x167   :  { %3941 = vrcp.f32 %v839_v36 }
 0x16f   :  { %v3938_v7 = vpop.eup %3937 }
 0x170   :  { %v3940_v34 = vpop.eup %3939  ;;  %v843_v35 = vmul.f32 %v3938_v7, %v3936_v32  ;;  %v215_v7 = vrot.slane %v198_v58, %v4498_v9 }
 0x171   :  { %v842_v38 = vmul.f32 %v3940_v34, %v608_v0  ;;  %v3942_v45 = vpop.eup %3941  ;;  %v197_v0 = vmul.f32 %v189_v18, %v171_v63 }
 0x173   :  { %v4511_v44 = vadd.f32 %v843_v35, %v842_v38  ;;  %v185_v35 = vrot.slane %v167_v56, %v4503_v26  ;;  %v223_v52 = vadd.f32 %v215_v7, %v197_v0 }
 0x175   :  { %3943 = vtanh.f32 %v4511_v44  ;;  %v196_v57 = vmul.f32 %v185_v35, %v171_v63 }
 0x177   :  { %v222_v14 = vadd.f32 %v211_v8, %v196_v57 }
 0x17f   :  { %v3944_v48 = vpop.eup %3943 }
 0x180   :  { %v846_v49 = vmul.f32 %v3944_v48, %v3942_v45 }
 0x182   :  { %916 = vmatmul.mubr.f32.vlgmr.msra.gmra.mrb[2].mxu0 %v846_v49  ;;  %987 = vmatmul.mubr.f32.vlgmr.msra.gmra.mrb[2].mxu1 %v846_v49 }
 0x183   :  { %3322 = vmatpush1.bf16.msra.mxu0 %v4354_v11  ;;  %3354 = vmatpush1.bf16.msra.mxu1 %v4357_v15 }
 0x184   :  { %3324 = vmatprep.subr.bf16.mxu0 %v4361_v19  ;;  %3356 = vmatprep.subr.bf16.mxu1 %v4363_v20 }
 0x185   :  { %1089 = vmatprep.mubr.f32.mxu0 %v4190_v1  ;;  %1160 = vmatprep.mubr.f32.mxu1 %v4190_v1 }
 0x187   :  { %3326 = vmatpush1.bf16.msra.mxu0 %v4366_v24  ;;  %3358 = vmatpush1.bf16.msra.mxu1 %v4370_v28 }
 0x188   :  { %3328 = vmatprep.subr.bf16.mxu0 %v4372_v29  ;;  %3360 = vmatprep.subr.bf16.mxu1 %v4374_v33 }
 0x18b   :  { %3330 = vmatpush1.bf16.msra.mxu0 %v4377_v37  ;;  %3362 = vmatpush1.bf16.msra.mxu1 %v4381_v41 }
 0x18c   :  { %3332 = vmatprep.subr.bf16.mxu0 %v4383_v42  ;;  %3364 = vmatprep.subr.bf16.mxu1 %v4386_v46 }
 0x18f   :  { %3334 = vmatpush1.bf16.msra.mxu0 %v4389_v53  ;;  %3366 = vmatpush1.bf16.msra.mxu1 %v4393_v54 }
 0x190   :  { %3336 = vmatprep.subr.bf16.mxu0 %v4395_v55  ;;  %3368 = vmatprep.subr.bf16.mxu1 %v4398_v59 }
 0x193   :  { %3338 = vmatpush1.bf16.msra.mxu0 %v4401_v3  ;;  %3370 = vmatpush1.bf16.msra.mxu1 %v4405_v4 }
 0x194   :  { %3340 = vmatprep.subr.bf16.mxu0 %v4407_v5  ;;  %3372 = vmatprep.subr.bf16.mxu1 %v4410_v12 }
 0x197   :  { %3342 = vmatpush1.bf16.msra.mxu0 %v4413_v21  ;;  %3374 = vmatpush1.bf16.msra.mxu1 %v4417_v23 }
 0x198   :  { %3344 = vmatprep.subr.bf16.mxu0 %v4419_v25  ;;  %3376 = vmatprep.subr.bf16.mxu1 %v4424_v31 }
 0x19b   :  { %3346 = vmatpush1.bf16.msra.mxu0 %v4428_v39  ;;  %3378 = vmatpush1.bf16.msra.mxu1 %v4432_v40 }
 0x19c   :  { %3348 = vmatprep.subr.bf16.mxu0 %v4434_v43  ;;  %3380 = vmatprep.subr.bf16.mxu1 %v4437_v47 }
 0x19f   :  { %3350 = vmatpush1.bf16.msra.mxu0 %v4440_v50  ;;  %3382 = vmatpush1.bf16.msra.mxu1 %v4444_v51 }
 0x1a0   :  { %3384 = vmatprep.subr.bf16.mxu0 %v4350_v6  ;;  %3416 = vmatprep.subr.bf16.mxu1 %v4352_v10 }
 0x255   :  { %v917_v27 = vpop.f32.mrb[2].mxu0  ;;  %v988_v32 = vpop.f32.mrb[2].mxu1 }
 0x256   :  { %v993_v34 = vadd.f32 %v917_v27, %v220_v22  ;;  %v919_v36 = vpop.f32.mrb[3].mxu0  ;;  %v990_v38 = vpop.f32.mrb[3].mxu1  ;;  %v995_v17 = vadd.f32 %v988_v32, %v222_v14 }
 0x257   :  { %v994_v45 = vadd.f32 %v919_v36, %v221_v61  ;;  %v996_v13 = vadd.f32 %v990_v38, %v223_v52 }
 0x258   :  { %v2751_v48 = vmul.f32 -1.442695, %v993_v34 }
 0x259   :  { %v2752_v49 = vmul.f32 -1.442695, %v994_v45  ;;  %v2753_v16 = vmul.f32 -1.442695, %v996_v13 }
 0x25a   :  { %3945 = vpow2.f32 %v2751_v48  ;;  %v234_v48 = vpop.permute.xlu1 %233 }
 0x25b   :  { %3947 = vpow2.f32 %v2752_v49  ;;  %v261_v49 = vld [vmem:[%s5065_s5] sm:$0xf] }
 0x25c   :  { %3949 = vpow2.f32 %v2753_v16  ;;  %v266_v8 = vrot.slane %v261_v49, %v4486_v60  ;;  %v270_v14 = vrot.slane %v261_v49, %v4491_v62 }
 0x25d   :  { %3951 = vtanh.f32 %v995_v17 }
 0x264   :  { %v3946_v18 = vpop.eup %3945 }
 0x265   :  { %v3948_v2 = vpop.eup %3947  ;;  %v1000_v22 = vadd.f32 1.0, %v3946_v18 }
 0x266   :  { %v1006_v56 = vadd.f32 1.0, %v3948_v2  ;;  %v3950_v61 = vpop.eup %3949  ;;  %v4194_v2 = vmov 3  }
 0x267   :  { %3953 = vrcp.f32 %v1000_v22  ;;  %v3952_v27 = vpop.eup %3951  ;;  %v1013_v34 = vadd.f32 1.0, %v3950_v61  ;;  %3921 = vset.pattern.permute.xlu1 %v4194_v2 }
 0x268   :  { %3955 = vrcp.f32 %v1006_v56  ;;  %296 = vperm.xlu1 %3921, %v4421_v30  }
 0x269   :  { %3957 = vrcp.f32 %v1013_v34 }
 0x271   :  { %v3954_v0 = vpop.eup %3953 }
 0x272   :  { %v3956_v7 = vpop.eup %3955  ;;  %v1017_v63 = vmul.f32 %v3954_v0, %v3952_v27  ;;  %v278_v27 = vrot.slane %v261_v49, %v4498_v9 }
 0x273   :  { %v1016_v58 = vmul.f32 %v3956_v7, %v4511_v44  ;;  %v3958_v32 = vpop.eup %3957  ;;  %v230_v44 = vld [vmem:[%s5063_s3] sm:$0xf] }
 0x274   :  { %v240_v45 = vrot.slane %v230_v44, %v4486_v60  ;;  %v244_v52 = vrot.slane %v230_v44, %v4491_v62  ;;  %v252_v16 = vrot.slane %v230_v44, %v4498_v9  ;;  %v248_v7 = vrot.slane %v230_v44, %v4503_v26 }
 0x275   :  { %v4564_v35 = vadd.f32 %v1017_v63, %v1016_v58 }
 0x276   :  { %v257_v57 = vmul.f32 %v240_v45, %v234_v48  ;;  %v258_v13 = vmul.f32 %v244_v52, %v234_v48  ;;  %v260_v61 = vmul.f32 %v252_v16, %v234_v48  ;;  %v259_v2 = vmul.f32 %v248_v7, %v234_v48 }
 0x277   :  { %3959 = vtanh.f32 %v4564_v35  ;;  %v274_v45 = vrot.slane %v261_v49, %v4503_v26 }
 0x278   :  { %v283_v17 = vadd.f32 %v266_v8, %v257_v57  ;;  %v284_v18 = vadd.f32 %v270_v14, %v258_v13 }
 0x279   :  { %v285_v57 = vadd.f32 %v274_v45, %v259_v2 }
 0x281   :  { %v3960_v36 = vpop.eup %3959 }
 0x282   :  { %v1020_v38 = vmul.f32 %v3960_v36, %v3958_v32 }
 0x284   :  { %1090 = vmatmul.mubr.f32.vlgmr.msra.gmra.mrb[4].mxu0 %v1020_v38  ;;  %1161 = vmatmul.mubr.f32.vlgmr.msra.gmra.mrb[4].mxu1 %v1020_v38  ;;  %v286_v38 = vadd.f32 %v278_v27, %v260_v61 }
 0x285   :  { %3386 = vmatpush1.bf16.msra.mxu0 %v4354_v11  ;;  %3418 = vmatpush1.bf16.msra.mxu1 %v4357_v15 }
 0x286   :  { %3388 = vmatprep.subr.bf16.mxu0 %v4361_v19  ;;  %3420 = vmatprep.subr.bf16.mxu1 %v4363_v20 }
 0x287   :  { %1263 = vmatprep.mubr.f32.mxu0 %v4190_v1  ;;  %1334 = vmatprep.mubr.f32.mxu1 %v4190_v1 }
 0x289   :  { %3390 = vmatpush1.bf16.msra.mxu0 %v4366_v24  ;;  %3422 = vmatpush1.bf16.msra.mxu1 %v4370_v28 }
 0x28a   :  { %3392 = vmatprep.subr.bf16.mxu0 %v4372_v29  ;;  %3424 = vmatprep.subr.bf16.mxu1 %v4374_v33 }
 0x28d   :  { %3394 = vmatpush1.bf16.msra.mxu0 %v4377_v37  ;;  %3426 = vmatpush1.bf16.msra.mxu1 %v4381_v41 }
 0x28e   :  { %3396 = vmatprep.subr.bf16.mxu0 %v4383_v42  ;;  %3428 = vmatprep.subr.bf16.mxu1 %v4386_v46 }
 0x291   :  { %3398 = vmatpush1.bf16.msra.mxu0 %v4389_v53  ;;  %3430 = vmatpush1.bf16.msra.mxu1 %v4393_v54 }
 0x292   :  { %3400 = vmatprep.subr.bf16.mxu0 %v4395_v55  ;;  %3432 = vmatprep.subr.bf16.mxu1 %v4398_v59 }
 0x295   :  { %3402 = vmatpush1.bf16.msra.mxu0 %v4401_v3  ;;  %3434 = vmatpush1.bf16.msra.mxu1 %v4405_v4 }
 0x296   :  { %3404 = vmatprep.subr.bf16.mxu0 %v4407_v5  ;;  %3436 = vmatprep.subr.bf16.mxu1 %v4410_v12 }
 0x299   :  { %3406 = vmatpush1.bf16.msra.mxu0 %v4413_v21  ;;  %3438 = vmatpush1.bf16.msra.mxu1 %v4417_v23 }
 0x29a   :  { %3408 = vmatprep.subr.bf16.mxu0 %v4419_v25  ;;  %3440 = vmatprep.subr.bf16.mxu1 %v4424_v31 }
 0x29d   :  { %3410 = vmatpush1.bf16.msra.mxu0 %v4428_v39  ;;  %3442 = vmatpush1.bf16.msra.mxu1 %v4432_v40 }
 0x29e   :  { %3412 = vmatprep.subr.bf16.mxu0 %v4434_v43  ;;  %3444 = vmatprep.subr.bf16.mxu1 %v4437_v47 }
 0x2a1   :  { %3414 = vmatpush1.bf16.msra.mxu0 %v4440_v50  ;;  %3446 = vmatpush1.bf16.msra.mxu1 %v4444_v51 }
 0x2a2   :  { %3448 = vmatprep.subr.bf16.mxu0 %v4350_v6  ;;  %3480 = vmatprep.subr.bf16.mxu1 %v4352_v10 }
 0x357   :  { %v1091_v22 = vpop.f32.mrb[4].mxu0  ;;  %v1162_v56 = vpop.f32.mrb[4].mxu1 }
 0x358   :  { %v1167_v0 = vadd.f32 %v1091_v22, %v283_v17  ;;  %v1093_v63 = vpop.f32.mrb[5].mxu0  ;;  %v1164_v34 = vpop.f32.mrb[5].mxu1  ;;  %v1169_v13 = vadd.f32 %v1162_v56, %v285_v57 }
 0x359   :  { %v1168_v58 = vadd.f32 %v1093_v63, %v284_v18  ;;  %v1170_v52 = vadd.f32 %v1164_v34, %v286_v38  ;;  %v324_v38 = vld [vmem:[%s5065_s5] sm:$0xf] }
 0x35a   :  { %v2754_v32 = vmul.f32 -1.442695, %v1167_v0 }
 0x35b   :  { %v2755_v36 = vmul.f32 -1.442695, %v1168_v58  ;;  %v2756_v8 = vmul.f32 -1.442695, %v1170_v52  ;;  %v293_v58 = vld [vmem:[%s5063_s3] sm:$0xf]  ;;  %v329_v52 = vrot.slane %v324_v38, %v4486_v60 }
 0x35c   :  { %3961 = vpow2.f32 %v2754_v32  ;;  %v303_v32 = vrot.slane %v293_v58, %v4486_v60  ;;  %v307_v2 = vrot.slane %v293_v58, %v4491_v62 }
 0x35d   :  { %3963 = vpow2.f32 %v2755_v36  ;;  %v297_v36 = vpop.permute.xlu1 %296 }
 0x35e   :  { %3965 = vpow2.f32 %v2756_v8  ;;  %v320_v45 = vmul.f32 %v303_v32, %v297_v36  ;;  %v321_v57 = vmul.f32 %v307_v2, %v297_v36  ;;  %v333_v8 = vrot.slane %v324_v38, %v4491_v62 }
 0x35f   :  { %3967 = vtanh.f32 %v1169_v13  ;;  %v315_v13 = vrot.slane %v293_v58, %v4498_v9  ;;  %v337_v32 = vrot.slane %v324_v38, %v4503_v26 }
 0x366   :  { %v3962_v14 = vpop.eup %3961 }
 0x367   :  { %v3964_v16 = vpop.eup %3963  ;;  %v1174_v17 = vadd.f32 1.0, %v3962_v14  ;;  %v346_v14 = vadd.f32 %v329_v52, %v320_v45 }
 0x368   :  { %v1180_v44 = vadd.f32 1.0, %v3964_v16  ;;  %v3966_v18 = vpop.eup %3965  ;;  %v347_v16 = vadd.f32 %v333_v8, %v321_v57 }
 0x369   :  { %3969 = vrcp.f32 %v1174_v17  ;;  %v3968_v22 = vpop.eup %3967  ;;  %v1187_v0 = vadd.f32 1.0, %v3966_v18  ;;  %v323_v18 = vmul.f32 %v315_v13, %v297_v36 }
 0x36a   :  { %3971 = vrcp.f32 %v1180_v44 }
 0x36b   :  { %3973 = vrcp.f32 %v1187_v0 }
 0x373   :  { %v3970_v61 = vpop.eup %3969 }
 0x374   :  { %v3972_v27 = vpop.eup %3971  ;;  %v1191_v48 = vmul.f32 %v3970_v61, %v3968_v22  ;;  %v341_v22 = vrot.slane %v324_v38, %v4498_v9 }
 0x375   :  { %v1190_v49 = vmul.f32 %v3972_v27, %v4564_v35  ;;  %v3974_v56 = vpop.eup %3973  ;;  %v4195_v35 = vmov 4   ;;  %v311_v27 = vrot.slane %v293_v58, %v4503_v26 }
 0x376   :  { %3922 = vset.pattern.permute.xlu1 %v4195_v35 }
 0x377   :  { %v4617_v7 = vadd.f32 %v1191_v48, %v1190_v49  ;;  %359 = vperm.xlu1 %3922, %v4421_v30   ;;  %v322_v35 = vmul.f32 %v311_v27, %v297_v36 }
 0x379   :  { %3975 = vtanh.f32 %v4617_v7  ;;  %v348_v45 = vadd.f32 %v337_v32, %v322_v35 }
 0x383   :  { %v3976_v63 = vpop.eup %3975 }
 0x384   :  { %v1194_v34 = vmul.f32 %v3976_v63, %v3974_v56 }
 0x386   :  { %1264 = vmatmul.mubr.f32.vlgmr.msra.gmra.mrb[6].mxu0 %v1194_v34  ;;  %1335 = vmatmul.mubr.f32.vlgmr.msra.gmra.mrb[6].mxu1 %v1194_v34  ;;  %v349_v34 = vadd.f32 %v341_v22, %v323_v18 }
 0x387   :  { %3450 = vmatpush1.bf16.msra.mxu0 %v4354_v11  ;;  %3482 = vmatpush1.bf16.msra.mxu1 %v4357_v15 }
 0x388   :  { %3452 = vmatprep.subr.bf16.mxu0 %v4361_v19  ;;  %3484 = vmatprep.subr.bf16.mxu1 %v4363_v20 }
 0x389   :  { %1437 = vmatprep.mubr.f32.mxu0 %v4190_v1  ;;  %1508 = vmatprep.mubr.f32.mxu1 %v4190_v1 }
 0x38b   :  { %3454 = vmatpush1.bf16.msra.mxu0 %v4366_v24  ;;  %3486 = vmatpush1.bf16.msra.mxu1 %v4370_v28 }
 0x38c   :  { %3456 = vmatprep.subr.bf16.mxu0 %v4372_v29  ;;  %3488 = vmatprep.subr.bf16.mxu1 %v4374_v33 }
 0x38f   :  { %3458 = vmatpush1.bf16.msra.mxu0 %v4377_v37  ;;  %3490 = vmatpush1.bf16.msra.mxu1 %v4381_v41 }
 0x390   :  { %3460 = vmatprep.subr.bf16.mxu0 %v4383_v42  ;;  %3492 = vmatprep.subr.bf16.mxu1 %v4386_v46 }
 0x393   :  { %3462 = vmatpush1.bf16.msra.mxu0 %v4389_v53  ;;  %3494 = vmatpush1.bf16.msra.mxu1 %v4393_v54 }
 0x394   :  { %3464 = vmatprep.subr.bf16.mxu0 %v4395_v55  ;;  %3496 = vmatprep.subr.bf16.mxu1 %v4398_v59 }
 0x397   :  { %3466 = vmatpush1.bf16.msra.mxu0 %v4401_v3  ;;  %3498 = vmatpush1.bf16.msra.mxu1 %v4405_v4 }
 0x398   :  { %3468 = vmatprep.subr.bf16.mxu0 %v4407_v5  ;;  %3500 = vmatprep.subr.bf16.mxu1 %v4410_v12 }
 0x39b   :  { %3470 = vmatpush1.bf16.msra.mxu0 %v4413_v21  ;;  %3502 = vmatpush1.bf16.msra.mxu1 %v4417_v23 }
 0x39c   :  { %3472 = vmatprep.subr.bf16.mxu0 %v4419_v25  ;;  %3504 = vmatprep.subr.bf16.mxu1 %v4424_v31 }
 0x39f   :  { %3474 = vmatpush1.bf16.msra.mxu0 %v4428_v39  ;;  %3506 = vmatpush1.bf16.msra.mxu1 %v4432_v40 }
 0x3a0   :  { %3476 = vmatprep.subr.bf16.mxu0 %v4434_v43  ;;  %3508 = vmatprep.subr.bf16.mxu1 %v4437_v47 }
 0x3a3   :  { %3478 = vmatpush1.bf16.msra.mxu0 %v4440_v50  ;;  %3510 = vmatpush1.bf16.msra.mxu1 %v4444_v51 }
 0x3a4   :  { %3512 = vmatprep.subr.bf16.mxu0 %v4350_v6  ;;  %3544 = vmatprep.subr.bf16.mxu1 %v4352_v10 }
 0x459   :  { %v1265_v17 = vpop.f32.mrb[6].mxu0  ;;  %v1336_v44 = vpop.f32.mrb[6].mxu1 }
 0x45a   :  { %v1341_v61 = vadd.f32 %v1265_v17, %v346_v14  ;;  %v1267_v48 = vpop.f32.mrb[7].mxu0  ;;  %v1338_v0 = vpop.f32.mrb[7].mxu1  ;;  %v1343_v57 = vadd.f32 %v1336_v44, %v348_v45 }
 0x45b   :  { %v1342_v49 = vadd.f32 %v1267_v48, %v347_v16  ;;  %v1344_v2 = vadd.f32 %v1338_v0, %v349_v34  ;;  %v387_v34 = vld [vmem:[%s5065_s5] sm:$0xf] }
 0x45c   :  { %v2757_v56 = vmul.f32 -1.442695, %v1341_v61 }
 0x45d   :  { %v2758_v63 = vmul.f32 -1.442695, %v1342_v49  ;;  %v2759_v52 = vmul.f32 -1.442695, %v1344_v2  ;;  %v356_v49 = vld [vmem:[%s5063_s3] sm:$0xf]  ;;  %v392_v2 = vrot.slane %v387_v34, %v4486_v60 }
 0x45e   :  { %3977 = vpow2.f32 %v2757_v56  ;;  %v366_v56 = vrot.slane %v356_v49, %v4486_v60  ;;  %v370_v35 = vrot.slane %v356_v49, %v4491_v62 }
 0x45f   :  { %3979 = vpow2.f32 %v2758_v63  ;;  %v360_v63 = vpop.permute.xlu1 %359 }
 0x460   :  { %3981 = vpow2.f32 %v2759_v52  ;;  %v383_v32 = vmul.f32 %v366_v56, %v360_v63  ;;  %v384_v45 = vmul.f32 %v370_v35, %v360_v63  ;;  %v396_v52 = vrot.slane %v387_v34, %v4491_v62 }
 0x461   :  { %3983 = vtanh.f32 %v1343_v57 }
 0x462   :  { %v409_v57 = vadd.f32 %v392_v2, %v383_v32 }
 0x468   :  { %v3978_v8 = vpop.eup %3977 }
 0x469   :  { %v3980_v13 = vpop.eup %3979  ;;  %v1348_v14 = vadd.f32 1.0, %v3978_v8  ;;  %v410_v8 = vadd.f32 %v396_v52, %v384_v45 }
 0x46a   :  { %v1354_v58 = vadd.f32 1.0, %v3980_v13  ;;  %v3982_v16 = vpop.eup %3981 }
 0x46b   :  { %3985 = vrcp.f32 %v1348_v14  ;;  %v3984_v17 = vpop.eup %3983  ;;  %v1361_v61 = vadd.f32 1.0, %v3982_v16  ;;  %v404_v16 = vrot.slane %v387_v34, %v4498_v9 }
 0x46c   :  { %3987 = vrcp.f32 %v1354_v58 }
 0x46d   :  { %3989 = vrcp.f32 %v1361_v61 }
 0x475   :  { %v3986_v18 = vpop.eup %3985 }
 0x476   :  { %v3988_v22 = vpop.eup %3987  ;;  %v1365_v36 = vmul.f32 %v3986_v18, %v3984_v17  ;;  %v374_v18 = vrot.slane %v356_v49, %v4503_v26 }
 0x477   :  { %v1364_v38 = vmul.f32 %v3988_v22, %v4617_v7  ;;  %v3990_v44 = vpop.eup %3989  ;;  %v4196_v7 = vmov 5  }
 0x478   :  { %3923 = vset.pattern.permute.xlu0 %v4196_v7  ;;  %v400_v7 = vrot.slane %v387_v34, %v4503_v26 }
 0x479   :  { %v4670_v27 = vadd.f32 %v1365_v36, %v1364_v38  ;;  %422 = vperm.xlu0 %3923, %v4421_v30   ;;  %v378_v30 = vrot.slane %v356_v49, %v4498_v9 }
 0x47b   :  { %3991 = vtanh.f32 %v4670_v27  ;;  %v386_v58 = vmul.f32 %v378_v30, %v360_v63 }
 0x485   :  { %v3992_v48 = vpop.eup %3991 }
 0x486   :  { %v1368_v0 = vmul.f32 %v3992_v48, %v3990_v44  ;;  %v412_v48 = vadd.f32 %v404_v16, %v386_v58 }
 0x488   :  { %1438 = vmatmul.mubr.f32.vlgmr.msra.gmra.mrb[8].mxu0 %v1368_v0  ;;  %1509 = vmatmul.mubr.f32.vlgmr.msra.gmra.mrb[8].mxu1 %v1368_v0  ;;  %v385_v0 = vmul.f32 %v374_v18, %v360_v63 }
 0x489   :  { %3514 = vmatpush1.bf16.msra.mxu0 %v4354_v11  ;;  %3546 = vmatpush1.bf16.msra.mxu1 %v4357_v15 }
 0x48a   :  { %3516 = vmatprep.subr.bf16.mxu0 %v4361_v19  ;;  %3548 = vmatprep.subr.bf16.mxu1 %v4363_v20  ;;  %v411_v35 = vadd.f32 %v400_v7, %v385_v0 }
 0x48b   :  { %1611 = vmatprep.mubr.f32.mxu0 %v4190_v1  ;;  %1682 = vmatprep.mubr.f32.mxu1 %v4190_v1 }
 0x48d   :  { %3518 = vmatpush1.bf16.msra.mxu0 %v4366_v24  ;;  %3550 = vmatpush1.bf16.msra.mxu1 %v4370_v28 }
 0x48e   :  { %3520 = vmatprep.subr.bf16.mxu0 %v4372_v29  ;;  %3552 = vmatprep.subr.bf16.mxu1 %v4374_v33 }
 0x491   :  { %3522 = vmatpush1.bf16.msra.mxu0 %v4377_v37  ;;  %3554 = vmatpush1.bf16.msra.mxu1 %v4381_v41 }
 0x492   :  { %3524 = vmatprep.subr.bf16.mxu0 %v4383_v42  ;;  %3556 = vmatprep.subr.bf16.mxu1 %v4386_v46 }
 0x495   :  { %3526 = vmatpush1.bf16.msra.mxu0 %v4389_v53  ;;  %3558 = vmatpush1.bf16.msra.mxu1 %v4393_v54 }
 0x496   :  { %3528 = vmatprep.subr.bf16.mxu0 %v4395_v55  ;;  %3560 = vmatprep.subr.bf16.mxu1 %v4398_v59 }
 0x499   :  { %3530 = vmatpush1.bf16.msra.mxu0 %v4401_v3  ;;  %3562 = vmatpush1.bf16.msra.mxu1 %v4405_v4 }
 0x49a   :  { %3532 = vmatprep.subr.bf16.mxu0 %v4407_v5  ;;  %3564 = vmatprep.subr.bf16.mxu1 %v4410_v12 }
 0x49d   :  { %3534 = vmatpush1.bf16.msra.mxu0 %v4413_v21  ;;  %3566 = vmatpush1.bf16.msra.mxu1 %v4417_v23 }
 0x49e   :  { %3536 = vmatprep.subr.bf16.mxu0 %v4419_v25  ;;  %3568 = vmatprep.subr.bf16.mxu1 %v4424_v31 }
 0x4a1   :  { %3538 = vmatpush1.bf16.msra.mxu0 %v4428_v39  ;;  %3570 = vmatpush1.bf16.msra.mxu1 %v4432_v40 }
 0x4a2   :  { %3540 = vmatprep.subr.bf16.mxu0 %v4434_v43  ;;  %3572 = vmatprep.subr.bf16.mxu1 %v4437_v47 }
 0x4a5   :  { %3542 = vmatpush1.bf16.msra.mxu0 %v4440_v50  ;;  %3574 = vmatpush1.bf16.msra.mxu1 %v4444_v51 }
 0x4a6   :  { %3576 = vmatprep.subr.bf16.mxu0 %v4350_v6  ;;  %3608 = vmatprep.subr.bf16.mxu1 %v4352_v10 }
 0x55b   :  { %v1439_v13 = vpop.f32.mrb[8].mxu0  ;;  %v1510_v14 = vpop.f32.mrb[8].mxu1 }
 0x55c   :  { %v1515_v17 = vadd.f32 %v1439_v13, %v409_v57  ;;  %v1441_v22 = vpop.f32.mrb[9].mxu0  ;;  %v1512_v36 = vpop.f32.mrb[9].mxu1  ;;  %v1517_v2 = vadd.f32 %v1510_v14, %v411_v35 }
 0x55d   :  { %v1516_v61 = vadd.f32 %v1441_v22, %v410_v8  ;;  %v1518_v56 = vadd.f32 %v1512_v36, %v412_v48  ;;  %v4197_v36 = vmov 6   ;;  %v450_v48 = vld [vmem:[%s5065_s5] sm:$0xf] }
 0x55e   :  { %v2760_v38 = vmul.f32 -1.442695, %v1515_v17  ;;  %3924 = vset.pattern.permute.xlu1 %v4197_v36  ;;  %v455_v0 = vrot.slane %v450_v48, %v4486_v60 }
 0x55f   :  { %v2761_v44 = vmul.f32 -1.442695, %v1516_v61  ;;  %v2762_v32 = vmul.f32 -1.442695, %v1518_v56  ;;  %v419_v61 = vld [vmem:[%s5063_s3] sm:$0xf]  ;;  %v459_v56 = vrot.slane %v450_v48, %v4491_v62 }
 0x560   :  { %3993 = vpow2.f32 %v2760_v38  ;;  %v429_v38 = vrot.slane %v419_v61, %v4486_v60  ;;  %v441_v35 = vrot.slane %v419_v61, %v4498_v9 }
 0x561   :  { %3995 = vpow2.f32 %v2761_v44  ;;  %v423_v44 = vpop.permute.xlu0 %422 }
 0x562   :  { %3997 = vpow2.f32 %v2762_v32 }
 0x563   :  { %3999 = vtanh.f32 %v1517_v2 }
 0x56a   :  { %v3994_v45 = vpop.eup %3993 }
 0x56b   :  { %v3996_v52 = vpop.eup %3995  ;;  %v1522_v30 = vadd.f32 1.0, %v3994_v45 }
 0x56c   :  { %v1528_v49 = vadd.f32 1.0, %v3996_v52  ;;  %v3998_v57 = vpop.eup %3997 }
 0x56d   :  { %4001 = vrcp.f32 %v1522_v30  ;;  %v4000_v8 = vpop.eup %3999  ;;  %v1535_v16 = vadd.f32 1.0, %v3998_v57  ;;  %v449_v30 = vmul.f32 %v441_v35, %v423_v44 }
 0x56e   :  { %4003 = vrcp.f32 %v1528_v49  ;;  %v467_v49 = vrot.slane %v450_v48, %v4498_v9 }
 0x56f   :  { %4005 = vrcp.f32 %v1535_v16 }
 0x577   :  { %v4002_v13 = vpop.eup %4001 }
 0x578   :  { %v4004_v58 = vpop.eup %4003  ;;  %v1539_v63 = vmul.f32 %v4002_v13, %v4000_v8  ;;  %v437_v8 = vrot.slane %v419_v61, %v4503_v26 }
 0x579   :  { %v1538_v34 = vmul.f32 %v4004_v58, %v4670_v27  ;;  %v4006_v14 = vpop.eup %4005  ;;  %v4760_v27 = vld [vmem:[#allocation4] sm:$0xff] }
 0x57a   :  { %485 = vperm.xlu1 %3924, %v4760_v27  }
 0x57b   :  { %v4723_v17 = vadd.f32 %v1539_v63, %v1538_v34 }
 0x57d   :  { %4007 = vtanh.f32 %v4723_v17 }
 0x587   :  { %v4008_v18 = vpop.eup %4007 }
 0x588   :  { %v1542_v22 = vmul.f32 %v4008_v18, %v4006_v14  ;;  %v475_v14 = vadd.f32 %v467_v49, %v449_v30  ;;  %v448_v18 = vmul.f32 %v437_v8, %v423_v44 }
 0x58a   :  { %1612 = vmatmul.mubr.f32.vlgmr.msra.gmra.mrb[10].mxu0 %v1542_v22  ;;  %1683 = vmatmul.mubr.f32.vlgmr.msra.gmra.mrb[10].mxu1 %v1542_v22  ;;  %v463_v22 = vrot.slane %v450_v48, %v4503_v26 }
 0x58b   :  { %3578 = vmatpush1.bf16.msra.mxu0 %v4354_v11  ;;  %3610 = vmatpush1.bf16.msra.mxu1 %v4357_v15 }
 0x58c   :  { %3580 = vmatprep.subr.bf16.mxu0 %v4361_v19  ;;  %3612 = vmatprep.subr.bf16.mxu1 %v4363_v20 }
 0x58d   :  { %1785 = vmatprep.mubr.f32.mxu0 %v4190_v1  ;;  %1856 = vmatprep.mubr.f32.mxu1 %v4190_v1 }
 0x58f   :  { %3582 = vmatpush1.bf16.msra.mxu0 %v4366_v24  ;;  %3614 = vmatpush1.bf16.msra.mxu1 %v4370_v28 }
 0x590   :  { %3584 = vmatprep.subr.bf16.mxu0 %v4372_v29  ;;  %3616 = vmatprep.subr.bf16.mxu1 %v4374_v33 }
 0x593   :  { %3586 = vmatpush1.bf16.msra.mxu0 %v4377_v37  ;;  %3618 = vmatpush1.bf16.msra.mxu1 %v4381_v41 }
 0x594   :  { %3588 = vmatprep.subr.bf16.mxu0 %v4383_v42  ;;  %3620 = vmatprep.subr.bf16.mxu1 %v4386_v46 }
 0x597   :  { %3590 = vmatpush1.bf16.msra.mxu0 %v4389_v53  ;;  %3622 = vmatpush1.bf16.msra.mxu1 %v4393_v54 }
 0x598   :  { %3592 = vmatprep.subr.bf16.mxu0 %v4395_v55  ;;  %3624 = vmatprep.subr.bf16.mxu1 %v4398_v59 }
 0x59b   :  { %3594 = vmatpush1.bf16.msra.mxu0 %v4401_v3  ;;  %3626 = vmatpush1.bf16.msra.mxu1 %v4405_v4 }
 0x59c   :  { %3596 = vmatprep.subr.bf16.mxu0 %v4407_v5  ;;  %3628 = vmatprep.subr.bf16.mxu1 %v4410_v12 }
 0x59f   :  { %3598 = vmatpush1.bf16.msra.mxu0 %v4413_v21  ;;  %3630 = vmatpush1.bf16.msra.mxu1 %v4417_v23 }
 0x5a0   :  { %3600 = vmatprep.subr.bf16.mxu0 %v4419_v25  ;;  %3632 = vmatprep.subr.bf16.mxu1 %v4424_v31 }
 0x5a3   :  { %3602 = vmatpush1.bf16.msra.mxu0 %v4428_v39  ;;  %3634 = vmatpush1.bf16.msra.mxu1 %v4432_v40 }
 0x5a4   :  { %3604 = vmatprep.subr.bf16.mxu0 %v4434_v43  ;;  %3636 = vmatprep.subr.bf16.mxu1 %v4437_v47 }
 0x5a7   :  { %3606 = vmatpush1.bf16.msra.mxu0 %v4440_v50  ;;  %3638 = vmatpush1.bf16.msra.mxu1 %v4444_v51 }
 0x5a8   :  { %3640 = vmatprep.subr.bf16.mxu0 %v4350_v6  ;;  %3672 = vmatprep.subr.bf16.mxu1 %v4352_v10  ;;  %v433_v6 = vrot.slane %v419_v61, %v4491_v62  ;;  %v446_v10 = vmul.f32 %v429_v38, %v423_v44  ;;  %v474_v38 = vadd.f32 %v463_v22, %v448_v18 }
 0x5aa   :  { %v447_v7 = vmul.f32 %v433_v6, %v423_v44  ;;  %v472_v32 = vadd.f32 %v455_v0, %v446_v10 }
 0x5ac   :  { %v473_v2 = vadd.f32 %v459_v56, %v447_v7 }
 0x65d   :  { %v1613_v45 = vpop.f32.mrb[10].mxu0  ;;  %v1684_v52 = vpop.f32.mrb[10].mxu1 }
 0x65e   :  { %v1689_v57 = vadd.f32 %v1613_v45, %v472_v32  ;;  %v1615_v13 = vpop.f32.mrb[11].mxu0  ;;  %v1686_v58 = vpop.f32.mrb[11].mxu1  ;;  %v1691_v10 = vadd.f32 %v1684_v52, %v474_v38 }
 0x65f   :  { %v1690_v63 = vadd.f32 %v1615_v13, %v473_v2  ;;  %v1692_v36 = vadd.f32 %v1686_v58, %v475_v14 }
 0x660   :  { %v2763_v16 = vmul.f32 -1.442695, %v1689_v57 }
 0x661   :  { %v2764_v34 = vmul.f32 -1.442695, %v1690_v63  ;;  %v2765_v6 = vmul.f32 -1.442695, %v1692_v36 }
 0x662   :  { %4009 = vpow2.f32 %v2763_v16 }
 0x663   :  { %4011 = vpow2.f32 %v2764_v34 }
 0x664   :  { %4013 = vpow2.f32 %v2765_v6 }
 0x665   :  { %4015 = vtanh.f32 %v1691_v10 }
 0x66c   :  { %v4010_v0 = vpop.eup %4009 }
 0x66d   :  { %v4012_v7 = vpop.eup %4011  ;;  %v1696_v56 = vadd.f32 1.0, %v4010_v0 }
 0x66e   :  { %v1702_v61 = vadd.f32 1.0, %v4012_v7  ;;  %v4014_v35 = vpop.eup %4013 }
 0x66f   :  { %4017 = vrcp.f32 %v1696_v56  ;;  %v4016_v32 = vpop.eup %4015  ;;  %v1709_v30 = vadd.f32 1.0, %v4014_v35  ;;  %v2080_v35 = vld [vmem:[#allocation9 + $0x8] sm:$0xff] }
 0x670   :  { %4019 = vrcp.f32 %v1702_v61  ;;  %v2079_v61 = vld [vmem:[#allocation9] sm:$0xff] }
 0x671   :  { %4021 = vrcp.f32 %v1709_v30 }
 0x679   :  { %v4018_v2 = vpop.eup %4017 }
 0x67a   :  { %v4020_v45 = vpop.eup %4019  ;;  %v1713_v44 = vmul.f32 %v4018_v2, %v4016_v32  ;;  %v4835_v32 = vpack.c.bf16 %v2080_v35, %v2079_v61  ;;  %v4199_v2 = vmov 0.0|0.0  }
 0x67b   :  { %v1712_v48 = vmul.f32 %v4020_v45, %v4723_v17  ;;  %v4022_v52 = vpop.eup %4021  ;;  %v2081_v45 = vld [vmem:[#allocation9 + $0x10] sm:$0xff] }
 0x67d   :  { %v4778_v49 = vadd.f32 %v1713_v44, %v1712_v48  ;;  %v2082_v44 = vld [vmem:[#allocation9 + $0x18] sm:$0xff]  ;;  %v2083_v48 = vld [vmem:[#allocation9 + $0x20] sm:$0xff] }
 0x67e   :  { %v4841_v30 = vpack.c.bf16 %v2082_v44, %v2081_v45 }
 0x67f   :  { %4023 = vtanh.f32 %v4778_v49 }
 0x689   :  { %v4024_v57 = vpop.eup %4023 }
 0x68a   :  { %v1716_v8 = vmul.f32 %v4024_v57, %v4022_v52  ;;  %v2085_v57 = vld [vmem:[#allocation9 + $0x30] sm:$0xff] }
 0x68c   :  { %1786 = vmatmul.mubr.f32.vlgmr.msra.gmra.mrb[12].mxu0 %v1716_v8  ;;  %1857 = vmatmul.mubr.f32.vlgmr.msra.gmra.mrb[12].mxu1 %v1716_v8  ;;  %v2086_v8 = vld [vmem:[#allocation9 + $0x38] sm:$0xff] }
 0x68d   :  { %3642 = vmatpush1.bf16.msra.mxu0 %v4354_v11  ;;  %3674 = vmatpush1.bf16.msra.mxu1 %v4357_v15  ;;  %v4198_v11 = vmov 7   ;;  %v5074_v15 = vmov 0  }
 0x68e   :  { %3644 = vmatprep.subr.bf16.mxu0 %v4361_v19  ;;  %3676 = vmatprep.subr.bf16.mxu1 %v4363_v20  ;;  %v482_v19 = vld [vmem:[%s5063_s3] sm:$0xf] }
 0x68f   :  { %1959 = vmatprep.mubr.f32.mxu0 %v4190_v1  ;;  %2030 = vmatprep.mubr.f32.mxu1 %v4190_v1  ;;  %v492_v20 = vrot.slane %v482_v19, %v4486_v60 }
 0x690   :  { %3925 = vset.pattern.permute.xlu1 %v4198_v11  ;;  %3926 = vset.pattern.permute.xlu0 %v4198_v11  ;;  %v4849_v11 = vpack.c.bf16 %v2086_v8, %v2085_v57 }
 0x691   :  { %3646 = vmatpush1.bf16.msra.mxu0 %v4366_v24  ;;  %3678 = vmatpush1.bf16.msra.mxu1 %v4370_v28  ;;  %v486_v24 = vpop.permute.xlu1 %485  ;;  %v513_v28 = vld [vmem:[%s5065_s5] sm:$0xf] }
 0x692   :  { %3648 = vmatprep.subr.bf16.mxu0 %v4372_v29  ;;  %3680 = vmatprep.subr.bf16.mxu1 %v4374_v33  ;;  %v496_v29 = vrot.slane %v482_v19, %v4491_v62  ;;  %v509_v33 = vmul.f32 %v492_v20, %v486_v24 }
 0x693   :  { %548 = vperm.xlu1 %3925, %v4760_v27   ;;  %2069 = vperm.xlu0 %3926, %v4760_v27  }
 0x695   :  { %3650 = vmatpush1.bf16.msra.mxu0 %v4377_v37  ;;  %3682 = vmatpush1.bf16.msra.mxu1 %v4381_v41  ;;  %v518_v37 = vrot.slane %v513_v28, %v4486_v60  ;;  %v510_v41 = vmul.f32 %v496_v29, %v486_v24  ;;  %v2091_v29 = vld [vmem:[#allocation9 + $0x60] sm:$0xff] }
 0x696   :  { %3652 = vmatprep.subr.bf16.mxu0 %v4383_v42  ;;  %3684 = vmatprep.subr.bf16.mxu1 %v4386_v46  ;;  %v522_v42 = vrot.slane %v513_v28, %v4491_v62  ;;  %v504_v46 = vrot.slane %v482_v19, %v4498_v9 }
 0x697   :  { %3927 = vset.pattern.permute.xlu1 %v5074_v15  ;;  %3928 = vset.pattern.permute.xlu0 %v5074_v15  ;;  %v2087_v15 = vld [vmem:[#allocation9 + $0x40] sm:$0xff] }
 0x699   :  { %3654 = vmatpush1.bf16.msra.mxu0 %v4389_v53  ;;  %3686 = vmatpush1.bf16.msra.mxu1 %v4393_v54  ;;  %v535_v53 = vadd.f32 %v518_v37, %v509_v33  ;;  %v536_v54 = vadd.f32 %v522_v42, %v510_v41  ;;  %v2092_v37 = vld [vmem:[#allocation9 + $0x68] sm:$0xff]  ;;  %v2093_v42 = vld [vmem:[#allocation9 + $0x70] sm:$0xff] }
 0x69a   :  { %3656 = vmatprep.subr.bf16.mxu0 %v4395_v55  ;;  %3688 = vmatprep.subr.bf16.mxu1 %v4398_v59  ;;  %v4864_v41 = vpack.c.bf16 %v2092_v37, %v2091_v29 }
 0x69d   :  { %3658 = vmatpush1.bf16.msra.mxu0 %v4401_v3  ;;  %3690 = vmatpush1.bf16.msra.mxu1 %v4405_v4  ;;  %v512_v3 = vmul.f32 %v504_v46, %v486_v24  ;;  %v530_v4 = vrot.slane %v513_v28, %v4498_v9  ;;  %v2094_v46 = vld [vmem:[#allocation9 + $0x78] sm:$0xff] }
 0x69e   :  { %3660 = vmatprep.subr.bf16.mxu0 %v4407_v5  ;;  %3692 = vmatprep.subr.bf16.mxu1 %v4410_v12  ;;  %v500_v12 = vrot.slane %v482_v19, %v4503_v26  ;;  %v2088_v19 = vld [vmem:[#allocation9 + $0x48] sm:$0xff] }
 0x69f   :  { %v4853_v20 = vpack.c.bf16 %v2088_v19, %v2087_v15 }
 0x6a1   :  { %3662 = vmatpush1.bf16.msra.mxu0 %v4413_v21  ;;  %3694 = vmatpush1.bf16.msra.mxu1 %v4417_v23 }
 0x6a2   :  { %3664 = vmatprep.subr.bf16.mxu0 %v4419_v25  ;;  %3696 = vmatprep.subr.bf16.mxu1 %v4424_v31 }
 0x6a5   :  { %3666 = vmatpush1.bf16.msra.mxu0 %v4428_v39  ;;  %3698 = vmatpush1.bf16.msra.mxu1 %v4432_v40  ;;  %v538_v40 = vadd.f32 %v530_v4, %v512_v3  ;;  %v2177_v3 = vld [vmem:[#allocation11 + $0x10] sm:$0xff]  ;;  %v2178_v4 = vld [vmem:[#allocation11 + $0x18] sm:$0xff] }
 0x6a6   :  { %3668 = vmatprep.subr.bf16.mxu0 %v4434_v43  ;;  %3700 = vmatprep.subr.bf16.mxu1 %v4437_v47  ;;  %v511_v43 = vmul.f32 %v500_v12, %v486_v24  ;;  %v526_v47 = vrot.slane %v513_v28, %v4503_v26  ;;  %v2089_v24 = vld [vmem:[#allocation9 + $0x50] sm:$0xff]  ;;  %v2090_v28 = vld [vmem:[#allocation9 + $0x58] sm:$0xff]  ;;  %v2179_v12 = vld [vmem:[#allocation11 + $0x20] sm:$0xff] }
 0x6a7   :  { %v4857_v33 = vpack.c.bf16 %v2090_v28, %v2089_v24 }
 0x6a9   :  { %3670 = vmatpush1.bf16.msra.mxu0 %v4440_v50  ;;  %3702 = vmatpush1.bf16.msra.mxu1 %v4444_v51  ;;  %v537_v51 = vadd.f32 %v526_v47, %v511_v43 }
 0x6aa   :  { %3703 = vmatprep.subr.bf16.mxu0 %v4199_v2  ;;  %3727 = vmatprep.subr.bf16.mxu1 %v4199_v2 }
 0x712   :  { %v549_v47 = vpop.permute.xlu1 %548 }
 0x75f   :  { %v1787_v55 = vpop.f32.mrb[12].mxu0  ;;  %v1858_v59 = vpop.f32.mrb[12].mxu1 }
 0x760   :  { %v1863_v5 = vadd.f32 %v1787_v55, %v535_v53  ;;  %v1789_v21 = vpop.f32.mrb[13].mxu0  ;;  %v1860_v23 = vpop.f32.mrb[13].mxu1  ;;  %v1865_v27 = vadd.f32 %v1858_v59, %v537_v51  ;;  %v4868_v53 = vpack.c.bf16 %v2094_v46, %v2093_v42  ;;  %v2176_v55 = vld [vmem:[#allocation11 + $0x8] sm:$0xff] }
 0x761   :  { %v1864_v25 = vadd.f32 %v1789_v21, %v536_v54  ;;  %v1866_v50 = vadd.f32 %v1860_v23, %v538_v40  ;;  %v2175_v54 = vld [vmem:[#allocation11] sm:$0xff]  ;;  %v2180_v21 = vld [vmem:[#allocation11 + $0x28] sm:$0xff] }
 0x762   :  { %v2766_v31 = vmul.f32 -1.442695, %v1863_v5  ;;  %v4873_v59 = vpack.c.bf16 %v2176_v55, %v2175_v54  ;;  %v4876_v5 = vpack.c.bf16 %v2178_v4, %v2177_v3  ;;  %v4880_v23 = vpack.c.bf16 %v2180_v21, %v2179_v12  ;;  %v545_v40 = vld [vmem:[%s5063_s3] sm:$0xf] }
 0x763   :  { %v2767_v39 = vmul.f32 -1.442695, %v1864_v25  ;;  %v2768_v17 = vmul.f32 -1.442695, %v1866_v50  ;;  %v2181_v25 = vld [vmem:[#allocation11 + $0x30] sm:$0xff]  ;;  %v555_v43 = vrot.slane %v545_v40, %v4486_v60  ;;  %v559_v51 = vrot.slane %v545_v40, %v4491_v62  ;;  %v2184_v12 = vld [vmem:[#allocation11 + $0x48] sm:$0xff] }
 0x764   :  { %4025 = vpow2.f32 %v2766_v31  ;;  %v2182_v31 = vld [vmem:[#allocation11 + $0x38] sm:$0xff]  ;;  %v576_v50 = vld [vmem:[%s5065_s5] sm:$0xf] }
 0x765   :  { %4027 = vpow2.f32 %v2767_v39  ;;  %v4884_v39 = vpack.c.bf16 %v2182_v31, %v2181_v25  ;;  %v589_v45 = vrot.slane %v576_v50, %v4503_v26  ;;  %v2185_v25 = vld [vmem:[#allocation11 + $0x50] sm:$0xff]  ;;  %v2186_v31 = vld [vmem:[#allocation11 + $0x58] sm:$0xff] }
 0x766   :  { %4029 = vpow2.f32 %v2768_v17  ;;  %v572_v17 = vmul.f32 %v555_v43, %v549_v47  ;;  %v2187_v43 = vld [vmem:[#allocation11 + $0x60] sm:$0xff] }
 0x767   :  { %4031 = vtanh.f32 %v1865_v27  ;;  %v581_v27 = vrot.slane %v576_v50, %v4486_v60 }
 0x76e   :  { %v4026_v13 = vpop.eup %4025 }
 0x76f   :  { %v4028_v58 = vpop.eup %4027  ;;  %v1870_v63 = vadd.f32 1.0, %v4026_v13  ;;  %v573_v13 = vmul.f32 %v559_v51, %v549_v47  ;;  %v2189_v51 = vld [vmem:[#allocation11 + $0x70] sm:$0xff] }
 0x770   :  { %v1876_v16 = vadd.f32 1.0, %v4028_v58  ;;  %v4030_v34 = vpop.eup %4029  ;;  %v585_v58 = vrot.slane %v576_v50, %v4491_v62 }
 0x771   :  { %4033 = vrcp.f32 %v1870_v63  ;;  %v4032_v14 = vpop.eup %4031  ;;  %v1883_v38 = vadd.f32 1.0, %v4030_v34  ;;  %v567_v63 = vrot.slane %v545_v40, %v4498_v9 }
 0x772   :  { %4035 = vrcp.f32 %v1876_v16  ;;  %v598_v16 = vadd.f32 %v581_v27, %v572_v17  ;;  %v599_v34 = vadd.f32 %v585_v58, %v573_v13  ;;  %v2190_v17 = vld [vmem:[#allocation11 + $0x78] sm:$0xff]  ;;  %v4941_v13 = vld [vmem:[%s5066_s6] ss:$0 sm:$0xff]  ;;  %v2070_v58 = vpop.permute.xlu0 %2069  ;;  %s4201_s6 = smov 1  }
 0x773   :  { %4037 = vrcp.f32 %v1883_v38  ;;  %v4933_v27 = vpack.c.bf16 %v2190_v17, %v2189_v51 }
 0x77b   :  { %v4034_v18 = vpop.eup %4033 }
 0x77c   :  { %v4036_v22 = vpop.eup %4035  ;;  %v1887_v36 = vmul.f32 %v4034_v18, %v4032_v14 }
 0x77d   :  { %v1886_v6 = vmul.f32 %v4036_v22, %v4778_v49  ;;  %v4038_v0 = vpop.eup %4037  ;;  %v2084_v49 = vld [vmem:[#allocation9 + $0x28] sm:$0xff]  ;;  %v575_v22 = vmul.f32 %v567_v63, %v549_v47  ;;  %v2078_v63 = vmul.f32 %v4941_v13, %v2070_v58 }
 0x77e   :  { %v4845_v52 = vpack.c.bf16 %v2084_v49, %v2083_v48 }
 0x77f   :  { %v4832_v10 = vadd.f32 %v1887_v36, %v1886_v6  ;;  %v593_v36 = vrot.slane %v576_v50, %v4498_v9  ;;  %v563_v6 = vrot.slane %v545_v40, %v4503_v26  ;;  %v4926_v40 = vpack.c.bf16 %v2186_v31, %v2185_v25 }
 0x781   :  { %4039 = vtanh.f32 %v4832_v10  ;;  %v601_v35 = vadd.f32 %v593_v36, %v575_v22  ;;  %v574_v62 = vmul.f32 %v563_v6, %v549_v47  ;;  %v2188_v47 = vld [vmem:[#allocation11 + $0x68] sm:$0xff] }
 0x782   :  { %v4929_v50 = vpack.c.bf16 %v2188_v47, %v2187_v43 }
 0x783   :  { %v600_v48 = vadd.f32 %v589_v45, %v574_v62 }
 0x78b   :  { %v4040_v7 = vpop.eup %4039 }
 0x78c   :  { %v1890_v56 = vmul.f32 %v4040_v7, %v4038_v0 }
 0x78e   :  { %1960 = vmatmul.mubr.f32.vlgmr.msra.gmra.mrb[14].mxu0 %v1890_v56  ;;  %2031 = vmatmul.mubr.f32.vlgmr.msra.gmra.mrb[14].mxu1 %v1890_v56 }
 0x78f   :  { %3705 = vmatpush3.bf16.msra.mxu0 %v4835_v32  ;;  %2943 = vmatprep.mubr.msk.f32.mxu0 %vm4200_vm0, %v4190_v1 }
 0x790   :  { %3706 = vmatprep.subr.bf16.mxu0 %v4199_v2  ;;  %2978 = vmatprep.mubr.msk.f32.mxu1 %vm4200_vm0, %v4190_v1 }
 0x791   :  { %3729 = vmatpush3.bf16.msra.mxu1 %v4873_v59 }
 0x792   :  { %3730 = vmatprep.subr.bf16.mxu1 %v4199_v2 }
 0x793   :  { %3708 = vmatpush3.bf16.msra.mxu0 %v4841_v30 }
 0x794   :  { %3709 = vmatprep.subr.bf16.mxu0 %v4199_v2 }
 0x795   :  { %3732 = vmatpush3.bf16.msra.mxu1 %v4876_v5 }
 0x796   :  { %3733 = vmatprep.subr.bf16.mxu1 %v4199_v2 }
 0x797   :  { %3711 = vmatpush3.bf16.msra.mxu0 %v4845_v52 }
 0x798   :  { %3712 = vmatprep.subr.bf16.mxu0 %v4199_v2 }
 0x799   :  { %3735 = vmatpush3.bf16.msra.mxu1 %v4880_v23 }
 0x79a   :  { %3736 = vmatprep.subr.bf16.mxu1 %v4199_v2 }
 0x79b   :  { %3714 = vmatpush3.bf16.msra.mxu0 %v4849_v11 }
 0x79c   :  { %3715 = vmatprep.subr.bf16.mxu0 %v4199_v2 }
 0x79d   :  { %3738 = vmatpush3.bf16.msra.mxu1 %v4884_v39 }
 0x79e   :  { %3739 = vmatprep.subr.bf16.mxu1 %v4199_v2 }
 0x79f   :  { %3717 = vmatpush3.bf16.msra.mxu0 %v4853_v20 }
 0x7a0   :  { %3718 = vmatprep.subr.bf16.mxu0 %v4199_v2 }
 0x7a3   :  { %3720 = vmatpush3.bf16.msra.mxu0 %v4857_v33 }
 0x7a4   :  { %3721 = vmatprep.subr.bf16.mxu0 %v4199_v2 }
 0x7a7   :  { %3723 = vmatpush3.bf16.msra.mxu0 %v4864_v41 }
 0x7a8   :  { %3724 = vmatprep.subr.bf16.mxu0 %v4199_v2 }
 0x7ab   :  { %3726 = vmatpush3.bf16.msra.mxu0 %v4868_v53 }
 0x7ac   :  { %3751 = vmatprep.subr.bf16.mxu0 %v4199_v2 }
 0x861   :  { %v1961_v14 = vpop.f32.mrb[14].mxu0  ;;  %v2032_v18 = vpop.f32.mrb[14].mxu1 }
 0x862   :  { %v2037_v38 = vadd.f32 %v1961_v14, %v598_v16  ;;  %v1963_v0 = vpop.f32.mrb[15].mxu0  ;;  %v2034_v7 = vpop.f32.mrb[15].mxu1  ;;  %v2039_v57 = vadd.f32 %v2032_v18, %v600_v48 }
 0x863   :  { %v2038_v56 = vadd.f32 %v1963_v0, %v599_v34  ;;  %v2040_v44 = vadd.f32 %v2034_v7, %v601_v35  ;;  %v4947_v34 = vld [vmem:[%s5068_s8] ss:$0 sm:$0xff]  ;;  %s4202_s8 = smov 2  }
 0x864   :  { %v2769_v61 = vmul.f32 -1.442695, %v2037_v38  ;;  %v4986_v38 = vld [vmem:[#allocation3] ss:$0 sm:$0xff] }
 0x865   :  { %v2770_v60 = vmul.f32 -1.442695, %v2038_v56  ;;  %v2771_v49 = vmul.f32 -1.442695, %v2040_v44 }
 0x866   :  { %4041 = vpow2.f32 %v2769_v61 }
 0x867   :  { %4043 = vpow2.f32 %v2770_v60 }
 0x868   :  { %4045 = vpow2.f32 %v2771_v49 }
 0x869   :  { %4047 = vtanh.f32 %v2039_v57 }
 0x870   :  { %v4042_v8 = vpop.eup %4041 }
 0x871   :  { %v4044_v9 = vpop.eup %4043  ;;  %v2044_v15 = vadd.f32 1.0, %v4042_v8 }
 0x872   :  { %v2050_v19 = vadd.f32 1.0, %v4044_v9  ;;  %v4046_v24 = vpop.eup %4045 }
 0x873   :  { %4049 = vrcp.f32 %v2044_v15  ;;  %v4048_v28 = vpop.eup %4047  ;;  %v2057_v46 = vadd.f32 1.0, %v4046_v24 }
 0x874   :  { %4051 = vrcp.f32 %v2050_v19 }
 0x875   :  { %4053 = vrcp.f32 %v2057_v46 }
 0x87d   :  { %v4050_v29 = vpop.eup %4049 }
 0x87e   :  { %v4052_v37 = vpop.eup %4051  ;;  %v2061_v42 = vmul.f32 %v4050_v29, %v4048_v28 }
 0x87f   :  { %v2060_v26 = vmul.f32 %v4052_v37, %v4832_v10  ;;  %v4054_v55 = vpop.eup %4053  ;;  %v2183_v10 = vld [vmem:[#allocation11 + $0x40] sm:$0xff] }
 0x880   :  { %v4922_v21 = vpack.c.bf16 %v2184_v12, %v2183_v10 }
 0x881   :  { %v2062_v54 = vadd.f32 %v2061_v42, %v2060_v26 }
 0x882   :  { %3741 = vmatpush3.bf16.msra.mxu1 %v4922_v21 }
 0x883   :  { %4055 = vtanh.f32 %v2062_v54  ;;  %3742 = vmatprep.subr.bf16.mxu1 %v4199_v2 }
 0x886   :  { %3744 = vmatpush3.bf16.msra.mxu1 %v4926_v40 }
 0x887   :  { %3745 = vmatprep.subr.bf16.mxu1 %v4199_v2 }
 0x88a   :  { %3747 = vmatpush3.bf16.msra.mxu1 %v4929_v50 }
 0x88b   :  { %3748 = vmatprep.subr.bf16.mxu1 %v4199_v2 }
 0x88d   :  { %v4056_v3 = vpop.eup %4055 }
 0x88e   :  { %v2064_v4 = vmul.f32 %v4056_v3, %v4054_v55  ;;  %3750 = vmatpush3.bf16.msra.mxu1 %v4933_v27 }
 0x88f   :  { %3775 = vmatprep.subr.bf16.mxu1 %v4199_v2 }
 0x890   :  { %2944 = vmatmul.mubr.f32.vlgmr.msra.gmra.mrb[16].mxu0 %v2064_v4 }
 0x891   :  { %3753 = vmatpush3.bf16.msra.mxu0 %v4835_v32  ;;  %3013 = vmatprep.mubr.msk.f32.mxu0 %vm4200_vm0, %v4190_v1 }
 0x892   :  { %3754 = vmatprep.subr.bf16.mxu0 %v4199_v2 }
 0x895   :  { %3756 = vmatpush3.bf16.msra.mxu0 %v4841_v30 }
 0x896   :  { %3757 = vmatprep.subr.bf16.mxu0 %v4199_v2 }
 0x899   :  { %3759 = vmatpush3.bf16.msra.mxu0 %v4845_v52 }
 0x89a   :  { %3760 = vmatprep.subr.bf16.mxu0 %v4199_v2 }
 0x89d   :  { %3762 = vmatpush3.bf16.msra.mxu0 %v4849_v11 }
 0x89e   :  { %3763 = vmatprep.subr.bf16.mxu0 %v4199_v2 }
 0x8a1   :  { %3765 = vmatpush3.bf16.msra.mxu0 %v4853_v20 }
 0x8a2   :  { %3766 = vmatprep.subr.bf16.mxu0 %v4199_v2 }
 0x8a5   :  { %3768 = vmatpush3.bf16.msra.mxu0 %v4857_v33 }
 0x8a6   :  { %3769 = vmatprep.subr.bf16.mxu0 %v4199_v2 }
 0x8a9   :  { %3771 = vmatpush3.bf16.msra.mxu0 %v4864_v41 }
 0x8aa   :  { %3772 = vmatprep.subr.bf16.mxu0 %v4199_v2 }
 0x8ad   :  { %3774 = vmatpush3.bf16.msra.mxu0 %v4868_v53 }
 0x8ae   :  { %3799 = vmatprep.subr.bf16.mxu0 %v4199_v2 }
 0x963   :  { %v2161_v16 = vpop.f32.mrb[16].mxu0 }
 0x964   :  { %v2165_v14 = vadd.f32 %v2161_v16, %v2078_v63  ;;  %v2945_v18 = vpop.f32.mrb[17].mxu0 }
 0x966   :  { %v2173_v22 = vadd.f32 %v4947_v34, %v2165_v14 }
 0x968   :  { %4057 = vtanh.f32 %v2173_v22 }
 0x972   :  { %v4058_v36 = vpop.eup %4057 }
 0x973   :  { %2979 = vmatmul.mubr.f32.vlgmr.msra.gmra.mrb[16].mxu1 %v4058_v36  ;;  %3014 = vmatmul.mubr.f32.vlgmr.msra.gmra.mrb[18].mxu0 %v4058_v36 }
 0x974   :  { %3777 = vmatpush3.bf16.msra.mxu1 %v4873_v59  ;;  %3801 = vmatpush3.bf16.msra.mxu0 %v4835_v32 }
 0x975   :  { %3778 = vmatprep.subr.bf16.mxu1 %v4199_v2  ;;  %3802 = vmatprep.subr.bf16.mxu0 %v4199_v2 }
 0x976   :  { %3048 = vmatprep.mubr.msk.f32.mxu1 %vm4200_vm0, %v4190_v1  ;;  %3083 = vmatprep.mubr.msk.f32.mxu0 %vm4200_vm0, %v4190_v1 }
 0x978   :  { %3780 = vmatpush3.bf16.msra.mxu1 %v4876_v5  ;;  %3804 = vmatpush3.bf16.msra.mxu0 %v4841_v30 }
 0x979   :  { %3781 = vmatprep.subr.bf16.mxu1 %v4199_v2  ;;  %3805 = vmatprep.subr.bf16.mxu0 %v4199_v2 }
 0x97c   :  { %3783 = vmatpush3.bf16.msra.mxu1 %v4880_v23  ;;  %3807 = vmatpush3.bf16.msra.mxu0 %v4845_v52 }
 0x97d   :  { %3784 = vmatprep.subr.bf16.mxu1 %v4199_v2  ;;  %3808 = vmatprep.subr.bf16.mxu0 %v4199_v2 }
 0x980   :  { %3786 = vmatpush3.bf16.msra.mxu1 %v4884_v39  ;;  %3810 = vmatpush3.bf16.msra.mxu0 %v4849_v11 }
 0x981   :  { %3787 = vmatprep.subr.bf16.mxu1 %v4199_v2  ;;  %3811 = vmatprep.subr.bf16.mxu0 %v4199_v2 }
 0x984   :  { %3789 = vmatpush3.bf16.msra.mxu1 %v4922_v21  ;;  %3813 = vmatpush3.bf16.msra.mxu0 %v4853_v20 }
 0x985   :  { %3790 = vmatprep.subr.bf16.mxu1 %v4199_v2  ;;  %3814 = vmatprep.subr.bf16.mxu0 %v4199_v2 }
 0x988   :  { %3792 = vmatpush3.bf16.msra.mxu1 %v4926_v40  ;;  %3816 = vmatpush3.bf16.msra.mxu0 %v4857_v33 }
 0x989   :  { %3793 = vmatprep.subr.bf16.mxu1 %v4199_v2  ;;  %3817 = vmatprep.subr.bf16.mxu0 %v4199_v2 }
 0x98c   :  { %3795 = vmatpush3.bf16.msra.mxu1 %v4929_v50  ;;  %3819 = vmatpush3.bf16.msra.mxu0 %v4864_v41 }
 0x98d   :  { %3796 = vmatprep.subr.bf16.mxu1 %v4199_v2  ;;  %3820 = vmatprep.subr.bf16.mxu0 %v4199_v2 }
 0x990   :  { %3798 = vmatpush3.bf16.msra.mxu1 %v4933_v27  ;;  %3822 = vmatpush3.bf16.msra.mxu0 %v4868_v53 }
 0x991   :  { %3823 = vmatprep.subr.bf16.mxu1 %v4199_v2  ;;  %3847 = vmatprep.subr.bf16.mxu0 %v4199_v2 }
 0xa46   :  { %v2257_v6 = vpop.f32.mrb[16].mxu1  ;;  %v2342_v0 = vpop.f32.mrb[18].mxu0 }
 0xa47   :  { %v4989_v7 = vadd.f32 %v4986_v38, %v2257_v6  ;;  %v2980_v56 = vpop.f32.mrb[17].mxu1  ;;  %v3015_v61 = vpop.f32.mrb[19].mxu0 }
 0xa49   :  { %v2269_v60 = vmax.f32 %v4989_v7, 0.0 }
 0xa4b   :  { %2272 = vperm.xlu1 %3927, %v2269_v60  }
 0xaca   :  { %v2273_v35 = vpop.permute.xlu1 %2272 }
 0xacb   :  { %v2275_v62 = vmul.f32 %v4941_v13, %v2273_v35 }
 0xacd   :  { %v2346_v45 = vadd.f32 %v2342_v0, %v2275_v62 }
 0xacf   :  { %v2347_v44 = vadd.f32 %v4947_v34, %v2346_v45 }
 0xad1   :  { %4059 = vtanh.f32 %v2347_v44 }
 0xadb   :  { %v4060_v48 = vpop.eup %4059 }
 0xadc   :  { %3049 = vmatmul.mubr.f32.vlgmr.msra.gmra.mrb[18].mxu1 %v4060_v48  ;;  %3084 = vmatmul.mubr.f32.vlgmr.msra.gmra.mrb[20].mxu0 %v4060_v48 }
 0xadd   :  { %3825 = vmatpush3.bf16.msra.mxu1 %v4873_v59  ;;  %3849 = vmatpush3.bf16.msra.mxu0 %v4835_v32 }
 0xade   :  { %3826 = vmatprep.subr.bf16.mxu1 %v4199_v2  ;;  %3850 = vmatprep.subr.bf16.mxu0 %v4199_v2 }
 0xadf   :  { %3118 = vmatprep.mubr.msk.f32.mxu1 %vm4200_vm0, %v4190_v1  ;;  %3153 = vmatprep.mubr.msk.f32.mxu0 %vm4200_vm0, %v4190_v1 }
 0xae1   :  { %3828 = vmatpush3.bf16.msra.mxu1 %v4876_v5  ;;  %3852 = vmatpush3.bf16.msra.mxu0 %v4841_v30 }
 0xae2   :  { %3829 = vmatprep.subr.bf16.mxu1 %v4199_v2  ;;  %3853 = vmatprep.subr.bf16.mxu0 %v4199_v2 }
 0xae5   :  { %3831 = vmatpush3.bf16.msra.mxu1 %v4880_v23  ;;  %3855 = vmatpush3.bf16.msra.mxu0 %v4845_v52 }
 0xae6   :  { %3832 = vmatprep.subr.bf16.mxu1 %v4199_v2  ;;  %3856 = vmatprep.subr.bf16.mxu0 %v4199_v2 }
 0xae9   :  { %3834 = vmatpush3.bf16.msra.mxu1 %v4884_v39  ;;  %3858 = vmatpush3.bf16.msra.mxu0 %v4849_v11 }
 0xaea   :  { %3835 = vmatprep.subr.bf16.mxu1 %v4199_v2  ;;  %3859 = vmatprep.subr.bf16.mxu0 %v4199_v2 }
 0xaed   :  { %3837 = vmatpush3.bf16.msra.mxu1 %v4922_v21  ;;  %3861 = vmatpush3.bf16.msra.mxu0 %v4853_v20 }
 0xaee   :  { %3838 = vmatprep.subr.bf16.mxu1 %v4199_v2  ;;  %3862 = vmatprep.subr.bf16.mxu0 %v4199_v2 }
 0xaf1   :  { %3840 = vmatpush3.bf16.msra.mxu1 %v4926_v40  ;;  %3864 = vmatpush3.bf16.msra.mxu0 %v4857_v33 }
 0xaf2   :  { %3841 = vmatprep.subr.bf16.mxu1 %v4199_v2  ;;  %3865 = vmatprep.subr.bf16.mxu0 %v4199_v2 }
 0xaf5   :  { %3843 = vmatpush3.bf16.msra.mxu1 %v4929_v50  ;;  %3867 = vmatpush3.bf16.msra.mxu0 %v4864_v41 }
 0xaf6   :  { %3844 = vmatprep.subr.bf16.mxu1 %v4199_v2  ;;  %3868 = vmatprep.subr.bf16.mxu0 %v4199_v2 }
 0xaf9   :  { %3846 = vmatpush3.bf16.msra.mxu1 %v4933_v27  ;;  %3870 = vmatpush3.bf16.msra.mxu0 %v4868_v53 }
 0xafa   :  { %3871 = vmatprep.subr.bf16.mxu1 %v4199_v2 }
 0xbaf   :  { %v2415_v32 = vpop.f32.mrb[18].mxu1  ;;  %v2493_v30 = vpop.f32.mrb[20].mxu0 }
 0xbb0   :  { %v2419_v52 = vadd.f32 %v4986_v38, %v2415_v32  ;;  %v3050_v11 = vpop.f32.mrb[19].mxu1  ;;  %v3085_v20 = vpop.f32.mrb[21].mxu0 }
 0xbb2   :  { %v2420_v33 = vmax.f32 %v2419_v52, 0.0 }
 0xbb4   :  { %2423 = vperm.xlu1 %3927, %v2420_v33  }
 0xbb8   :  { %2723 = vrot.lane.b32.xlu1 %v2420_v33, %s4201_s6 }
 0xc33   :  { %v2424_v41 = vpop.permute.xlu1 %2423 }
 0xc34   :  { %v2426_v49 = vmul.f32 %v4941_v13, %v2424_v41 }
 0xc36   :  { %v2497_v57 = vadd.f32 %v2493_v30, %v2426_v49 }
 0xc37   :  { %v2724_v26 = vpop.permute.xlu1 %2723 }
 0xc38   :  { %v2498_v8 = vadd.f32 %v4947_v34, %v2497_v57  ;;  %v2734_v55 = vsel %vm2733_vm1, %v2269_v60, %v2724_v26 }
 0xc3a   :  { %4061 = vtanh.f32 %v2498_v8 }
 0xc44   :  { %v4062_v53 = vpop.eup %4061 }
 0xc45   :  { %3119 = vmatmul.mubr.f32.vlgmr.msra.gmra.mrb[20].mxu1 %v4062_v53  ;;  %3154 = vmatmul.mubr.f32.vlgmr.msra.gmra.mrb[22].mxu0 %v4062_v53 }
 0xc46   :  { %3873 = vmatpush3.bf16.msra.mxu1 %v4873_v59  ;;  %3188 = vmatprep.mubr.msk.f32.mxu1 %vm4200_vm0, %v4190_v1 }
 0xc47   :  { %3874 = vmatprep.subr.bf16.mxu1 %v4199_v2 }
 0xc4a   :  { %3876 = vmatpush3.bf16.msra.mxu1 %v4876_v5 }
 0xc4b   :  { %3877 = vmatprep.subr.bf16.mxu1 %v4199_v2 }
 0xc4e   :  { %3879 = vmatpush3.bf16.msra.mxu1 %v4880_v23 }
 0xc4f   :  { %3880 = vmatprep.subr.bf16.mxu1 %v4199_v2 }
 0xc52   :  { %3882 = vmatpush3.bf16.msra.mxu1 %v4884_v39 }
 0xc53   :  { %3883 = vmatprep.subr.bf16.mxu1 %v4199_v2 }
 0xc56   :  { %3885 = vmatpush3.bf16.msra.mxu1 %v4922_v21 }
 0xc57   :  { %3886 = vmatprep.subr.bf16.mxu1 %v4199_v2 }
 0xc5a   :  { %3888 = vmatpush3.bf16.msra.mxu1 %v4926_v40 }
 0xc5b   :  { %3889 = vmatprep.subr.bf16.mxu1 %v4199_v2 }
 0xc5e   :  { %3891 = vmatpush3.bf16.msra.mxu1 %v4929_v50 }
 0xc5f   :  { %3892 = vmatprep.subr.bf16.mxu1 %v4199_v2 }
 0xc62   :  { %3894 = vmatpush3.bf16.msra.mxu1 %v4933_v27 }
 0xd18   :  { %v2566_v1 = vpop.f32.mrb[20].mxu1  ;;  %v2644_v59 = vpop.f32.mrb[22].mxu0 }
 0xd19   :  { %v2570_v5 = vadd.f32 %v4986_v38, %v2566_v1  ;;  %v3120_v23 = vpop.f32.mrb[21].mxu1  ;;  %v3155_v39 = vpop.f32.mrb[23].mxu0 }
 0xd1b   :  { %v2571_v9 = vmax.f32 %v2570_v5, 0.0 }
 0xd1d   :  { %2726 = vrot.lane.b32.xlu1 %v2571_v9, %s4202_s8  ;;  %2574 = vperm.xlu0 %3928, %v2571_v9  }
 0xd8f   :  { %v2727_v54 = vpop.permute.xlu1 %2726 }
 0xd90   :  { %v2736_v3 = vsel %vm2735_vm2, %v2734_v55, %v2727_v54 }
 0xd9c   :  { %v2575_v15 = vpop.permute.xlu0 %2574 }
 0xd9d   :  { %v2577_v19 = vmul.f32 %v4941_v13, %v2575_v15 }
 0xd9f   :  { %v2648_v24 = vadd.f32 %v2644_v59, %v2577_v19 }
 0xda1   :  { %v2649_v28 = vadd.f32 %v4947_v34, %v2648_v24 }
 0xda3   :  { %4063 = vtanh.f32 %v2649_v28 }
 0xdad   :  { %v4064_v2 = vpop.eup %4063 }
 0xdae   :  { %3189 = vmatmul.mubr.f32.vlgmr.msra.gmra.mrb[22].mxu1 %v4064_v2 }
 0xe81   :  { %v2717_v29 = vpop.f32.mrb[22].mxu1 }
 0xe82   :  { %v2721_v37 = vadd.f32 %v4986_v38, %v2717_v29  ;;  %v3190_v42 = vpop.f32.mrb[23].mxu1 }
 0xe84   :  { %v2722_v46 = vmax.f32 %v2721_v37, 0.0 }
 0xe86   :  { %2730 = vrot.lane.b32.xlu0 %v2722_v46, %s4203_s0 }
 0xef8   :  { %v2731_v4 = vpop.permute.xlu0 %2730 }
 0xef9   :  { %v2738_v10 = vsel %vm2737_vm3, %v2736_v3, %v2731_v4 }
 0xefa   :  { %2740 = vst.msk [vmem:[%s5071_s11] sm:$0xff] %vm2739_vm4, %v2738_v10 }
 0xefb   :  { %2745 = vsyncpa [#allocation5], 1 }
 0xefc   :  { %2746 = vsyncpa [#allocation7], 1 }
 0xefd   :  { %2747 = vsyncpa [#allocation10], 1 }

</bundles_post_ra>
